<compile_context>
chip_gen: v7x
topology: tpu7x:2x2x1
jax: 0.10.0
libtpu: 0.0.40
codegen_flags: <defaults>
</compile_context>

<pallas_src>
import functools

import jax
import jax.numpy as jnp
from jax.experimental import pallas as pl
from jax.experimental.pallas import tpu as pltpu


def _round_up(n, m):
    return ((n + m - 1) // m) * m


def _vmem_budget_bytes():
    """Per-generation VMEM budget: ~85% of physical capacity.

    ~108 MiB on v5e/v6e (128 MiB physical), ~54 MiB on v7x (64 MiB physical).
    Falls back conservatively if the hardware query is unavailable.
    """
    try:
        cap = int(pltpu.get_tpu_info().vmem_capacity_bytes)
    except Exception:
        cap = 64 * 1024 * 1024
    return int(cap * 0.85)


# ----------------------------- Pallas kernel ------------------------------- #

def fused_gcn_kernel(*refs, nlayer, K, num_classes):
    """Entire GCN_RW_full eval forward in one kernel.

    refs = (att_smem, x, a_bf16, w0, b0, w1, b1, ..., w_nlayer, b_nlayer, out)
      att_smem : (nlayer, K+1) f32 in SMEM  (scalar hop weights)
      x        : (N_pad, F_pad) bf16 node features
      a_bf16   : (N_pad, N_pad) bf16 normalized adjacency
      w_i      : (in_pad, out_pad) bf16 padded linear weights
      b_i      : (1, out_pad) f32 padded biases
      out      : (N_pad, C_pad) f32 log-probabilities
    """
    att_ref = refs[0]
    x_ref = refs[1]
    a_ref = refs[2]
    wb = refs[3:-1]
    out_ref = refs[-1]

    h16 = x_ref[...]                   # bf16 activations feeding the MXU

    for i in range(nlayer):
        w = wb[2 * i][...]             # bf16
        b = wb[2 * i + 1][...]         # f32
        # Linear: bf16 MXU matmul, f32 accumulation, f32 bias add.
        z = jnp.dot(h16, w, preferred_element_type=jnp.float32) + b
        # K-hop weighted aggregation; att scalars come from SMEM, agg in f32.
        agg = z * att_ref[i, 0]
        z16 = z.astype(jnp.bfloat16)   # single cast feeding the hop chain
        for k in range(1, K + 1):
            # Read the adjacency from its VMEM ref at each dot site (stream
            # through the MXU; don't hold one giant bound value in vregs).
            zf = jnp.dot(a_ref[...], z16, preferred_element_type=jnp.float32)
            agg = agg + zf * att_ref[i, k]
            if k < K:
                z16 = zf.astype(jnp.bfloat16)
        # relu in f32, re-cast once for the next layer's bf16 MXU input.
        h16 = jnp.maximum(agg, 0.0).astype(jnp.bfloat16)

    # Final linear + row-wise log_softmax (lane-padded classes masked out).
    w = wb[2 * nlayer][...]
    b = wb[2 * nlayer + 1][...]
    logits = jnp.dot(h16, w, preferred_element_type=jnp.float32) + b
    col = jax.lax.broadcasted_iota(jnp.int32, logits.shape, 1)
    logits = jnp.where(col < num_classes, logits, -1e30)
    m = jnp.max(logits, axis=1, keepdims=True)
    zc = logits - m
    lse = jnp.log(jnp.sum(jnp.exp(zc), axis=1, keepdims=True))
    out_ref[...] = zc - lse


# ------------------------------ JAX wrapper --------------------------------- #

def gcn_rw_full_forward(x, a_norm, lin_ws, lin_bs, att, K, nlayer, num_classes):
    N, F = x.shape
    # 128-aligned N: lane-dense adjacency layout and full MXU tiles on the
    # dominant A @ z hop matmuls (was 8-aligned before).
    N_pad = _round_up(N, 128)

    dims = [F] + [lin_ws[i].shape[1] for i in range(nlayer)] + [num_classes]
    dims_pad = [_round_up(d, 128) for d in dims]

    # Zero-pad node features / adjacency (padded rows & cols never leak into
    # real rows because the padded adjacency columns are zero). Pre-cast the
    # MXU operands to bf16 in the wrapper.
    x_p = (jnp.zeros((N_pad, dims_pad[0]), jnp.float32)
           .at[:N, :F].set(x)
           .astype(jnp.bfloat16))
    a_p = (jnp.zeros((N_pad, N_pad), jnp.float32)
           .at[:N, :N].set(a_norm)
           .astype(jnp.bfloat16))

    # Zero-pad weights/biases to 128-lane multiples; weights bf16, biases f32.
    wb = []
    for i in range(nlayer + 1):
        w, b = lin_ws[i], lin_bs[i]
        di, do = w.shape
        wp = (jnp.zeros((dims_pad[i], dims_pad[i + 1]), jnp.float32)
              .at[:di, :do].set(w)
              .astype(jnp.bfloat16))
        bp = jnp.zeros((1, dims_pad[i + 1]), jnp.float32).at[0, :do].set(b)
        wb += [wp, bp]

    vmem = pl.BlockSpec(memory_space=pltpu.MemorySpace.VMEM)
    smem = pl.BlockSpec(memory_space=pltpu.MemorySpace.SMEM)

    out_p = pl.pallas_call(
        functools.partial(fused_gcn_kernel, nlayer=nlayer, K=K,
                          num_classes=num_classes),
        out_shape=jax.ShapeDtypeStruct((N_pad, dims_pad[-1]), jnp.float32),
        in_specs=[smem, vmem, vmem] + [vmem] * (2 * (nlayer + 1)),
        out_specs=vmem,
        compiler_params=pltpu.CompilerParams(
            vmem_limit_bytes=_vmem_budget_bytes()),
    )(att, x_p, a_p, *wb)

    return out_p[:N, :num_classes]


# ------------------------------ Graph / params ------------------------------ #

def build_normalized_adjacency(key, N, num_rand_edges):
    """Dense symmetric adjacency with self loops, symmetrically normalized."""
    k1, k2 = jax.random.split(key)
    src = jax.random.randint(k1, (num_rand_edges,), 0, N)
    dst = jax.random.randint(k2, (num_rand_edges,), 0, N)
    adj = jnp.zeros((N, N), jnp.float32)
    adj = adj.at[src, dst].set(1.0)
    adj = jnp.maximum(adj, adj.T)                              # to_undirected
    adj = jnp.maximum(adj, jnp.eye(N, dtype=jnp.float32))      # self loops
    deg = adj.sum(axis=0)                                      # sparsesum dim=0
    dinv_sqrt = deg ** (-0.5)
    # weight[e] = deg[src]^-0.5 * deg[dst]^-0.5  ->  dense D^-1/2 A D^-1/2
    return dinv_sqrt[:, None] * adj * dinv_sqrt[None, :]


def make_params(key, num_features, hidden, num_classes, nlayer, K, alpha):
    dims = [num_features] + [hidden] * nlayer + [num_classes]
    ws, bs = [], []
    for i in range(nlayer + 1):
        key, kw, kb = jax.random.split(key, 3)
        bound = 1.0 / jnp.sqrt(dims[i])
        ws.append(jax.random.uniform(kw, (dims[i], dims[i + 1]), jnp.float32,
                                     -bound, bound))
        bs.append(jax.random.uniform(kb, (dims[i + 1],), jnp.float32,
                                     -bound, bound))
    # att init: alpha*(1-alpha)^k for k=0..K, last entry (1-alpha)^K, per layer
    ks = jnp.arange(0, K + 1, dtype=jnp.float32)
    tmp = alpha * (1.0 - alpha) ** ks
    tmp = tmp.at[-1].set((1.0 - alpha) ** K)
    att = jnp.tile(tmp[None, :], (nlayer, 1))
    return ws, bs, att


def reference_forward(x, a_norm, ws, bs, att, K, nlayer):
    """Pure-JAX f32 reference (eval-mode PyTorch semantics)."""
    h = x
    for i in range(nlayer):
        z = h @ ws[i] + bs[i]
        agg = z * att[i, 0]
        for k in range(1, K + 1):
            z = a_norm @ z
            agg = agg + z * att[i, k]
        h = jnp.maximum(agg, 0.0)
    logits = h @ ws[nlayer] + bs[nlayer]
    return jax.nn.log_softmax(logits, axis=1)


# ---------------------------------- main ------------------------------------ #

if __name__ == "__main__":
    # small, module-consistent shapes
    N = 64              # num_nodes
    num_features = 32
    hidden = 32
    num_classes = 8
    nlayer = 2
    K = 3
    alpha = 0.5

    root = jax.random.PRNGKey(0)
    k_graph, k_feat, k_param = jax.random.split(root, 3)

    a_norm = build_normalized_adjacency(k_graph, N, num_rand_edges=4 * N)
    x = jax.random.normal(k_feat, (N, num_features), jnp.float32)
    lin_ws, lin_bs, att = make_params(k_param, num_features, hidden, num_classes,
                                      nlayer, K, alpha)

    out = gcn_rw_full_forward(x, a_norm, lin_ws, lin_bs, att, K, nlayer,
                              num_classes)
    out = jax.block_until_ready(out)

    assert out.shape == (N, num_classes)
    # rows of log_softmax must exponentiate-sum to ~1
    assert bool(jnp.all(jnp.abs(jnp.exp(out).sum(axis=1) - 1.0) < 1e-4))
    # match the f32 reference (bf16 MXU operands -> loose tolerance)
    ref = reference_forward(x, a_norm, lin_ws, lin_bs, att, K, nlayer)
    assert bool(jnp.allclose(out, ref, atol=5e-2, rtol=0.0))
    print("KERNEL_OK")
</pallas_src>

<mosaic_0001>
module attributes {stable_mosaic.version = 11 : i64} {
  func.func @fused_gcn_kernel(%arg0: memref<2x4xf32, #tpu.memory_space<smem>>, %arg1: memref<128x128xbf16, #tpu.memory_space<vmem>>, %arg2: memref<128x128xbf16, #tpu.memory_space<vmem>>, %arg3: memref<128x128xbf16, #tpu.memory_space<vmem>>, %arg4: memref<1x128xf32, #tpu.memory_space<vmem>>, %arg5: memref<128x128xbf16, #tpu.memory_space<vmem>>, %arg6: memref<1x128xf32, #tpu.memory_space<vmem>>, %arg7: memref<128x128xbf16, #tpu.memory_space<vmem>>, %arg8: memref<1x128xf32, #tpu.memory_space<vmem>>, %arg9: memref<128x128xf32, #tpu.memory_space<vmem>>) attributes {dimension_semantics = [], scalar_prefetch = 0 : i64, scratch_operands = 0 : i64, tpu.core_type = #tpu.core_type<tc>} {
    %c0 = arith.constant 0 : index
    %c0_0 = arith.constant 0 : index
    %0 = vector.load %arg1[%c0, %c0_0] : memref<128x128xbf16, #tpu.memory_space<vmem>>, vector<128x128xbf16>
    %c0_1 = arith.constant 0 : index
    %c0_2 = arith.constant 0 : index
    %1 = vector.load %arg3[%c0_1, %c0_2] : memref<128x128xbf16, #tpu.memory_space<vmem>>, vector<128x128xbf16>
    %c0_3 = arith.constant 0 : index
    %c0_4 = arith.constant 0 : index
    %2 = vector.load %arg4[%c0_3, %c0_4] : memref<1x128xf32, #tpu.memory_space<vmem>>, vector<1x128xf32>
    %cst = arith.constant dense<0.000000e+00> : vector<128x128xf32>
    %3 = tpu.matmul %0, %1, %cst {dimension_numbers = #tpu.dot_dimension_numbers<[1], [0], [0], [1], [0, 0, 1, 1], [], []>} : vector<128x128xbf16>, vector<128x128xbf16>, vector<128x128xf32> -> vector<128x128xf32>
    %4 = vector.broadcast %2 : vector<1x128xf32> to vector<128x128xf32>
    %5 = arith.addf %3, %4 : vector<128x128xf32>
    %c0_5 = arith.constant 0 : index
    %c0_6 = arith.constant 0 : index
    %6 = memref.load %arg0[%c0_5, %c0_6] : memref<2x4xf32, #tpu.memory_space<smem>>
    %7 = vector.broadcast %6 : f32 to vector<128x128xf32>
    %8 = arith.mulf %5, %7 : vector<128x128xf32>
    %9 = arith.truncf %5 : vector<128x128xf32> to vector<128x128xbf16>
    %c0_7 = arith.constant 0 : index
    %c0_8 = arith.constant 0 : index
    %10 = vector.load %arg2[%c0_7, %c0_8] : memref<128x128xbf16, #tpu.memory_space<vmem>>, vector<128x128xbf16>
    %cst_9 = arith.constant dense<0.000000e+00> : vector<128x128xf32>
    %11 = tpu.matmul %10, %9, %cst_9 {dimension_numbers = #tpu.dot_dimension_numbers<[1], [0], [0], [1], [0, 0, 1, 1], [], []>} : vector<128x128xbf16>, vector<128x128xbf16>, vector<128x128xf32> -> vector<128x128xf32>
    %c0_10 = arith.constant 0 : index
    %c1 = arith.constant 1 : index
    %12 = memref.load %arg0[%c0_10, %c1] : memref<2x4xf32, #tpu.memory_space<smem>>
    %13 = vector.broadcast %12 : f32 to vector<128x128xf32>
    %14 = arith.mulf %11, %13 : vector<128x128xf32>
    %15 = arith.addf %8, %14 : vector<128x128xf32>
    %16 = arith.truncf %11 : vector<128x128xf32> to vector<128x128xbf16>
    %c0_11 = arith.constant 0 : index
    %c0_12 = arith.constant 0 : index
    %17 = vector.load %arg2[%c0_11, %c0_12] : memref<128x128xbf16, #tpu.memory_space<vmem>>, vector<128x128xbf16>
    %cst_13 = arith.constant dense<0.000000e+00> : vector<128x128xf32>
    %18 = tpu.matmul %17, %16, %cst_13 {dimension_numbers = #tpu.dot_dimension_numbers<[1], [0], [0], [1], [0, 0, 1, 1], [], []>} : vector<128x128xbf16>, vector<128x128xbf16>, vector<128x128xf32> -> vector<128x128xf32>
    %c0_14 = arith.constant 0 : index
    %c2 = arith.constant 2 : index
    %19 = memref.load %arg0[%c0_14, %c2] : memref<2x4xf32, #tpu.memory_space<smem>>
    %20 = vector.broadcast %19 : f32 to vector<128x128xf32>
    %21 = arith.mulf %18, %20 : vector<128x128xf32>
    %22 = arith.addf %15, %21 : vector<128x128xf32>
    %23 = arith.truncf %18 : vector<128x128xf32> to vector<128x128xbf16>
    %c0_15 = arith.constant 0 : index
    %c0_16 = arith.constant 0 : index
    %24 = vector.load %arg2[%c0_15, %c0_16] : memref<128x128xbf16, #tpu.memory_space<vmem>>, vector<128x128xbf16>
    %cst_17 = arith.constant dense<0.000000e+00> : vector<128x128xf32>
    %25 = tpu.matmul %24, %23, %cst_17 {dimension_numbers = #tpu.dot_dimension_numbers<[1], [0], [0], [1], [0, 0, 1, 1], [], []>} : vector<128x128xbf16>, vector<128x128xbf16>, vector<128x128xf32> -> vector<128x128xf32>
    %c0_18 = arith.constant 0 : index
    %c3 = arith.constant 3 : index
    %26 = memref.load %arg0[%c0_18, %c3] : memref<2x4xf32, #tpu.memory_space<smem>>
    %27 = vector.broadcast %26 : f32 to vector<128x128xf32>
    %28 = arith.mulf %25, %27 : vector<128x128xf32>
    %29 = arith.addf %22, %28 : vector<128x128xf32>
    %cst_19 = arith.constant 0.000000e+00 : f32
    %30 = vector.broadcast %cst_19 : f32 to vector<128x128xf32>
    %31 = arith.maximumf %29, %30 : vector<128x128xf32>
    %32 = arith.truncf %31 : vector<128x128xf32> to vector<128x128xbf16>
    %c0_20 = arith.constant 0 : index
    %c0_21 = arith.constant 0 : index
    %33 = vector.load %arg5[%c0_20, %c0_21] : memref<128x128xbf16, #tpu.memory_space<vmem>>, vector<128x128xbf16>
    %c0_22 = arith.constant 0 : index
    %c0_23 = arith.constant 0 : index
    %34 = vector.load %arg6[%c0_22, %c0_23] : memref<1x128xf32, #tpu.memory_space<vmem>>, vector<1x128xf32>
    %cst_24 = arith.constant dense<0.000000e+00> : vector<128x128xf32>
    %35 = tpu.matmul %32, %33, %cst_24 {dimension_numbers = #tpu.dot_dimension_numbers<[1], [0], [0], [1], [0, 0, 1, 1], [], []>} : vector<128x128xbf16>, vector<128x128xbf16>, vector<128x128xf32> -> vector<128x128xf32>
    %36 = vector.broadcast %34 : vector<1x128xf32> to vector<128x128xf32>
    %37 = arith.addf %35, %36 : vector<128x128xf32>
    %c1_25 = arith.constant 1 : index
    %c0_26 = arith.constant 0 : index
    %38 = memref.load %arg0[%c1_25, %c0_26] : memref<2x4xf32, #tpu.memory_space<smem>>
    %39 = vector.broadcast %38 : f32 to vector<128x128xf32>
    %40 = arith.mulf %37, %39 : vector<128x128xf32>
    %41 = arith.truncf %37 : vector<128x128xf32> to vector<128x128xbf16>
    %c0_27 = arith.constant 0 : index
    %c0_28 = arith.constant 0 : index
    %42 = vector.load %arg2[%c0_27, %c0_28] : memref<128x128xbf16, #tpu.memory_space<vmem>>, vector<128x128xbf16>
    %cst_29 = arith.constant dense<0.000000e+00> : vector<128x128xf32>
    %43 = tpu.matmul %42, %41, %cst_29 {dimension_numbers = #tpu.dot_dimension_numbers<[1], [0], [0], [1], [0, 0, 1, 1], [], []>} : vector<128x128xbf16>, vector<128x128xbf16>, vector<128x128xf32> -> vector<128x128xf32>
    %c1_30 = arith.constant 1 : index
    %c1_31 = arith.constant 1 : index
    %44 = memref.load %arg0[%c1_30, %c1_31] : memref<2x4xf32, #tpu.memory_space<smem>>
    %45 = vector.broadcast %44 : f32 to vector<128x128xf32>
    %46 = arith.mulf %43, %45 : vector<128x128xf32>
    %47 = arith.addf %40, %46 : vector<128x128xf32>
    %48 = arith.truncf %43 : vector<128x128xf32> to vector<128x128xbf16>
    %c0_32 = arith.constant 0 : index
    %c0_33 = arith.constant 0 : index
    %49 = vector.load %arg2[%c0_32, %c0_33] : memref<128x128xbf16, #tpu.memory_space<vmem>>, vector<128x128xbf16>
    %cst_34 = arith.constant dense<0.000000e+00> : vector<128x128xf32>
    %50 = tpu.matmul %49, %48, %cst_34 {dimension_numbers = #tpu.dot_dimension_numbers<[1], [0], [0], [1], [0, 0, 1, 1], [], []>} : vector<128x128xbf16>, vector<128x128xbf16>, vector<128x128xf32> -> vector<128x128xf32>
    %c1_35 = arith.constant 1 : index
    %c2_36 = arith.constant 2 : index
    %51 = memref.load %arg0[%c1_35, %c2_36] : memref<2x4xf32, #tpu.memory_space<smem>>
    %52 = vector.broadcast %51 : f32 to vector<128x128xf32>
    %53 = arith.mulf %50, %52 : vector<128x128xf32>
    %54 = arith.addf %47, %53 : vector<128x128xf32>
    %55 = arith.truncf %50 : vector<128x128xf32> to vector<128x128xbf16>
    %c0_37 = arith.constant 0 : index
    %c0_38 = arith.constant 0 : index
    %56 = vector.load %arg2[%c0_37, %c0_38] : memref<128x128xbf16, #tpu.memory_space<vmem>>, vector<128x128xbf16>
    %cst_39 = arith.constant dense<0.000000e+00> : vector<128x128xf32>
    %57 = tpu.matmul %56, %55, %cst_39 {dimension_numbers = #tpu.dot_dimension_numbers<[1], [0], [0], [1], [0, 0, 1, 1], [], []>} : vector<128x128xbf16>, vector<128x128xbf16>, vector<128x128xf32> -> vector<128x128xf32>
    %c1_40 = arith.constant 1 : index
    %c3_41 = arith.constant 3 : index
    %58 = memref.load %arg0[%c1_40, %c3_41] : memref<2x4xf32, #tpu.memory_space<smem>>
    %59 = vector.broadcast %58 : f32 to vector<128x128xf32>
    %60 = arith.mulf %57, %59 : vector<128x128xf32>
    %61 = arith.addf %54, %60 : vector<128x128xf32>
    %cst_42 = arith.constant 0.000000e+00 : f32
    %62 = vector.broadcast %cst_42 : f32 to vector<128x128xf32>
    %63 = arith.maximumf %61, %62 : vector<128x128xf32>
    %64 = arith.truncf %63 : vector<128x128xf32> to vector<128x128xbf16>
    %c0_43 = arith.constant 0 : index
    %c0_44 = arith.constant 0 : index
    %65 = vector.load %arg7[%c0_43, %c0_44] : memref<128x128xbf16, #tpu.memory_space<vmem>>, vector<128x128xbf16>
    %c0_45 = arith.constant 0 : index
    %c0_46 = arith.constant 0 : index
    %66 = vector.load %arg8[%c0_45, %c0_46] : memref<1x128xf32, #tpu.memory_space<vmem>>, vector<1x128xf32>
    %cst_47 = arith.constant dense<0.000000e+00> : vector<128x128xf32>
    %67 = tpu.matmul %64, %65, %cst_47 {dimension_numbers = #tpu.dot_dimension_numbers<[1], [0], [0], [1], [0, 0, 1, 1], [], []>} : vector<128x128xbf16>, vector<128x128xbf16>, vector<128x128xf32> -> vector<128x128xf32>
    %68 = vector.broadcast %66 : vector<1x128xf32> to vector<128x128xf32>
    %69 = arith.addf %67, %68 : vector<128x128xf32>
    %70 = tpu.iota {dimensions = array<i32: 1>} : vector<128x128xi32>
    %c8_i32 = arith.constant 8 : i32
    %71 = vector.broadcast %c8_i32 : i32 to vector<128x128xi32>
    %72 = arith.cmpi slt, %70, %71 : vector<128x128xi32>
    %cst_48 = arith.constant -1.000000e+30 : f32
    %73 = vector.broadcast %cst_48 : f32 to vector<128x128xf32>
    %74 = arith.select %72, %69, %73 : vector<128x128xi1>, vector<128x128xf32>
    %cst_49 = arith.constant dense<0xFF800000> : vector<128xf32>
    %75 = vector.multi_reduction <maximumf>, %74, %cst_49 [1] : vector<128x128xf32> to vector<128xf32>
    %76 = vector.shape_cast %75 : vector<128xf32> to vector<128x1xf32>
    %77 = vector.broadcast %76 : vector<128x1xf32> to vector<128x128xf32>
    %78 = arith.subf %74, %77 : vector<128x128xf32>
    %79 = math.exp %78 : vector<128x128xf32>
    %cst_50 = arith.constant dense<0.000000e+00> : vector<128xf32>
    %80 = vector.multi_reduction <add>, %79, %cst_50 [1] : vector<128x128xf32> to vector<128xf32>
    %81 = vector.shape_cast %80 : vector<128xf32> to vector<128x1xf32>
    %82 = math.log %81 : vector<128x1xf32>
    %83 = vector.broadcast %82 : vector<128x1xf32> to vector<128x128xf32>
    %84 = arith.subf %78, %83 : vector<128x128xf32>
    %c0_51 = arith.constant 0 : index
    %c0_52 = arith.constant 0 : index
    %85 = vector.load %arg9[%c0_51, %c0_52] : memref<128x128xf32, #tpu.memory_space<vmem>>, vector<128x128xf32>
    tpu.vector_store %arg9[%c0_51, %c0_52], %84 {strides = array<i32>} : memref<128x128xf32, #tpu.memory_space<vmem>>, vector<128x128xf32>,
    return
  }
}

</mosaic_0001>

<bundles_post_ra>
// kernel: tpu_custom_call.1
= control target key start
LH: loop header
LB: loop body
LE: loop exit
PB: predicated region body
PF: predicated region fallthrough
CT: control target
= control target key end

     0   :  { %14 = vsyncpa [#allocation5], 0  ;;  %s3500_s0 = inlined_call_operand.hbm [shape: f32[2,4], index: 0, kind: input, shape index: {}]   ;;  %s3501_s1 = inlined_call_operand.hbm [shape: bf16[128,128], index: 1, kind: input, shape index: {}]   ;;  %s3502_s2 = inlined_call_operand.hbm [shape: bf16[128,128], index: 2, kind: input, shape index: {}]   ;;  %s3503_s3 = inlined_call_operand.hbm [shape: bf16[128,128], index: 3, kind: input, shape index: {}]   ;;  %s3504_s4 = inlined_call_operand.vmem [shape: f32[1,128], index: 4, kind: input, shape index: {}]   ;;  %s3505_s5 = inlined_call_operand.hbm [shape: bf16[128,128], index: 5, kind: input, shape index: {}]   ;;  %s3506_s6 = inlined_call_operand.vmem [shape: f32[1,128], index: 6, kind: input, shape index: {}]   ;;  %s3507_s7 = inlined_call_operand.hbm [shape: bf16[128,128], index: 7, kind: input, shape index: {}]   ;;  %s3508_s8 = inlined_call_operand.vmem [shape: f32[1,128], index: 8, kind: input, shape index: {}]   ;;  %s3509_s9 = inlined_call_operand.hbm [shape: f32[128,128], index: 9, kind: output, shape index: {}]  }
   0x1   :  { %15 = vsyncpa [#allocation3], 0 }
   0x2   :  { %16 = vsyncpa [#allocation8], 0 }
   0x3   :  { %17 = vsyncpa [#allocation11], 0 }
   0x4   :  { %18 = vsyncpa [#allocation4], 0  ;;  %s2650_s30 = smov [#allocation7]   ;;  %s2651_s11 = smov [#allocation10]  }
   0x5   :  { %s44_s10 = sshll.u32 %s2650_s30, 4  ;;  %s70_s12 = sshll.u32 %s2651_s11, 4  ;;  %s45_s10 = int_to_ptr.vmem [resolvable:$true] %s44_s10  ;;  %s2711_s12 = int_to_ptr.vmem [resolvable:$true] %s70_s12 }
   0x6   :  { %s2498_s15 = scalar_lea.hbm %s3502_s2, 1024 }
   0x7   :  { %p2499_p0 = scmp.ne.s32.totalorder %s3502_s2, %s2498_s15  ;;  %p2502_p1 = scmp.lt.u32.totalorder %s2498_s15, %s3502_s2 }
   0x9   :  { %p2504_p2 = pnand %p2502_p1, %p2499_p0 }
   0xb   :  { %2507 = shalt.err (!%p2504_p2)
}
   0xc   :  { %s2508_s20 = scalar_lea.vmem %s45_s10, 1024  ;;  %p2513_p4 = scmp.lt.s32.totalorder %s45_s10, %s45_s10 }
   0xd   :  { %p2509_p3 = scmp.ne.s32.totalorder %s45_s10, %s2508_s20  ;;  %p2514_p5 = scmp.lt.s32.totalorder %s2508_s20, %s2508_s20 }
   0xf   :  { %p2515_p6 = por %p2514_p5, %p2513_p4 }
  0x11   :  { %p2516_p7 = pnand %p2515_p6, %p2509_p3 }
  0x13   :  { %2519 = shalt.err (!%p2516_p7)
}
  0x14   :  { %s2652_s21 = smov 64   ;;  %s2653_s22 = smov 4  }
  0x15   :  { %50 = dma.hbm_to_vmem [thread:$0]  %s3502_s2, 1024, %s45_s10, [#allocation8], %s2652_s21, %s2652_s21, %s2653_s22  }
  0x16   :  { %s2520_s27 = scalar_lea.hbm %s3505_s5, 1024 }
  0x17   :  { %p2521_p8 = scmp.ne.s32.totalorder %s3505_s5, %s2520_s27  ;;  %p2524_p9 = scmp.lt.u32.totalorder %s2520_s27, %s3505_s5 }
  0x19   :  { %p2526_p10 = pnand %p2524_p9, %p2521_p8 }
  0x1b   :  { %2529 = shalt.err (!%p2526_p10)
}
  0x1c   :  { %s2530_s13 = scalar_lea.vmem %s2711_s12, 1024  ;;  %p2535_p12 = scmp.lt.s32.totalorder %s2711_s12, %s2711_s12 }
  0x1d   :  { %p2531_p11 = scmp.ne.s32.totalorder %s2711_s12, %s2530_s13  ;;  %p2536_p13 = scmp.lt.s32.totalorder %s2530_s13, %s2530_s13 }
  0x1f   :  { %p2537_p0 = por %p2536_p13, %p2535_p12 }
  0x21   :  { %p2538_p1 = pnand %p2537_p0, %p2531_p11 }
  0x23   :  { %2541 = shalt.err (!%p2538_p1)
}
  0x24   :  { %76 = dma.hbm_to_vmem [thread:$0]  %s3505_s5, 1024, %s2711_s12, [#allocation11], %s2652_s21, %s2652_s21, %s2653_s22  }
  0x25   :  { %s2542_s16 = scalar_lea.hbm %s3500_s0, 32 }
  0x26   :  { %p2543_p2 = scmp.ne.s32.totalorder %s3500_s0, %s2542_s16  ;;  %p2546_p3 = scmp.lt.u32.totalorder %s2542_s16, %s3500_s0 }
  0x28   :  { %p2548_p4 = pnand %p2546_p3, %p2543_p2 }
  0x2a   :  { %2551 = shalt.err (!%p2548_p4)
}
  0x2b   :  { %s2654_s23 = smov [#allocation2]   ;;  %s2655_s5 = smov [#allocation6]  }
  0x2c   :  { %26 = dma.hbm_to_smem %s3500_s0, 32, %s2654_s23, [#allocation5]  }
  0x2d   :  { %s32_s12 = sshll.u32 %s2655_s5, 4  ;;  %s2656_s26 = smov [#allocation9]   ;;  %s33_s12 = int_to_ptr.vmem [resolvable:$true] %s32_s12 }
  0x2e   :  { %s56_s27 = sshll.u32 %s2656_s26, 4  ;;  %s2552_s30 = scalar_lea.hbm %s3501_s1, 1024  ;;  %s57_s27 = int_to_ptr.vmem [resolvable:$true] %s56_s27 }
  0x2f   :  { %p2553_p5 = scmp.ne.s32.totalorder %s3501_s1, %s2552_s30  ;;  %p2556_p6 = scmp.lt.u32.totalorder %s2552_s30, %s3501_s1 }
  0x31   :  { %p2558_p7 = pnand %p2556_p6, %p2553_p5 }
  0x33   :  { %2561 = shalt.err (!%p2558_p7)
}
  0x34   :  { %s2562_s0 = scalar_lea.vmem %s33_s12, 1024  ;;  %p2567_p9 = scmp.lt.s32.totalorder %s33_s12, %s33_s12 }
  0x35   :  { %p2563_p8 = scmp.ne.s32.totalorder %s33_s12, %s2562_s0  ;;  %p2568_p10 = scmp.lt.s32.totalorder %s2562_s0, %s2562_s0 }
  0x37   :  { %p2569_p11 = por %p2568_p10, %p2567_p9 }
  0x39   :  { %p2570_p12 = pnand %p2569_p11, %p2563_p8 }
  0x3b   :  { %2573 = shalt.err (!%p2570_p12)
}
  0x3c   :  { %38 = dma.hbm_to_vmem [thread:$0]  %s3501_s1, 1024, %s33_s12, [#allocation3], %s2652_s21, %s2652_s21, %s2653_s22  }
  0x3d   :  { %s2574_s18 = scalar_lea.hbm %s3503_s3, 1024 }
  0x3e   :  { %p2575_p13 = scmp.ne.s32.totalorder %s3503_s3, %s2574_s18  ;;  %p2578_p0 = scmp.lt.u32.totalorder %s2574_s18, %s3503_s3 }
  0x40   :  { %p2580_p1 = pnand %p2578_p0, %p2575_p13 }
  0x42   :  { %2583 = shalt.err (!%p2580_p1)
}
  0x43   :  { %s2584_s25 = scalar_lea.vmem %s57_s27, 1024  ;;  %p2589_p3 = scmp.lt.s32.totalorder %s57_s27, %s57_s27 }
  0x44   :  { %p2585_p2 = scmp.ne.s32.totalorder %s57_s27, %s2584_s25  ;;  %p2590_p4 = scmp.lt.s32.totalorder %s2584_s25, %s2584_s25 }
  0x46   :  { %p2591_p5 = por %p2590_p4, %p2589_p3 }
  0x48   :  { %p2592_p6 = pnand %p2591_p5, %p2585_p2 }
  0x4a   :  { %2595 = shalt.err (!%p2592_p6)
}
  0x4b   :  { %62 = dma.hbm_to_vmem [thread:$0]  %s3503_s3, 1024, %s57_s27, [#allocation8], %s2652_s21, %s2652_s21, %s2653_s22  }
  0x4c   :  { %s2657_s12 = smov [#allocation12]   ;;  %s2596_s30 = scalar_lea.hbm %s3507_s7, 1024 }
  0x4d   :  { %s84_s26 = sshll.u32 %s2657_s12, 4  ;;  %p2597_p7 = scmp.ne.s32.totalorder %s3507_s7, %s2596_s30  ;;  %s85_s26 = int_to_ptr.vmem [resolvable:$true] %s84_s26 }
  0x4e   :  { %p2600_p8 = scmp.lt.u32.totalorder %s2596_s30, %s3507_s7 }
  0x50   :  { %p2602_p9 = pnand %p2600_p8, %p2597_p7 }
  0x52   :  { %2605 = shalt.err (!%p2602_p9)
}
  0x53   :  { %s2606_s0 = scalar_lea.vmem %s85_s26, 1024  ;;  %p2611_p11 = scmp.lt.s32.totalorder %s85_s26, %s85_s26 }
  0x54   :  { %p2607_p10 = scmp.ne.s32.totalorder %s85_s26, %s2606_s0  ;;  %p2612_p12 = scmp.lt.s32.totalorder %s2606_s0, %s2606_s0 }
  0x56   :  { %p2613_p13 = por %p2612_p12, %p2611_p11 }
  0x58   :  { %p2614_p0 = pnand %p2613_p13, %p2607_p10 }
  0x5a   :  { %2617 = shalt.err (!%p2614_p0)
}
  0x5b   :  { %90 = dma.hbm_to_vmem [thread:$0]  %s3507_s7, 1024, %s85_s26, [#allocation11], %s2652_s21, %s2652_s21, %s2653_s22  }
  0x5c   :  { %2640 = dma.done.wait [#allocation5], 32  }
  0x5d   :  { %2641 = vsyncadd [#allocation5], 4294967264 }
  0x5e   :  { %2642 = dma.done.wait [#allocation3], 1024  }
  0x5f   :  { %2643 = vsyncadd [#allocation3], 4294966272 }
  0x60   :  { %2644 = dma.done.wait [#allocation8], 2048  }
  0x61   :  { %2645 = vsyncadd [#allocation8], 4294965248 }
  0x62   :  { %2646 = dma.done.wait [#allocation11], 2048  }
  0x63   :  { %2647 = vsyncadd [#allocation11], 4294965248 }
  0x64   :  { %111 = sfence }
  0x65   :  { %v2387_v0 = vld [vmem:[#allocation9] sm:$0xff]   ;;  %v2388_v1 = vld [vmem:[#allocation9 + $0x8] sm:$0xff]   ;;  %v2389_v2 = vld [vmem:[#allocation9 + $0x10] sm:$0xff]   ;;  %s1903_s22 = sld [smem:[#allocation2 + $0x1]]  ;;  %s1904_s14 = sld [smem:[#allocation2 + $0x2]] }
  0x66   :  { %2072 = vmatprep.subr.bf16.mxu0 %v2387_v0  ;;  %v2390_v3 = vld [vmem:[#allocation9 + $0x18] sm:$0xff]   ;;  %v2395_v4 = vld [vmem:[#allocation6] sm:$0xff]   ;;  %v2392_v6 = vld [vmem:[#allocation9 + $0x28] sm:$0xff]   ;;  %s1905_s15 = sld [smem:[#allocation2 + $0x3]]  ;;  %s1916_s18 = sld [smem:[#allocation2 + $0x81]] }
  0x67   :  { %2073 = vmatpush3.bf16.msra.mxu0 %v2387_v0  ;;  %2088 = vmatprep.mubr.bf16.mxu0 %v2395_v4  ;;  %v2391_v5 = vld [vmem:[#allocation9 + $0x20] sm:$0xff]   ;;  %v2393_v7 = vld [vmem:[#allocation9 + $0x30] sm:$0xff]   ;;  %v2394_v8 = vld [vmem:[#allocation9 + $0x38] sm:$0xff]   ;;  %s1917_s19 = sld [smem:[#allocation2 + $0x82]]  ;;  %s1918_s20 = sld [smem:[#allocation2 + $0x83]] }
  0x68   :  { %2074 = vmatprep.subr.bf16.mxu0 %v2388_v1  ;;  %v2396_v9 = vld [vmem:[#allocation6 + $0x8] sm:$0xff]   ;;  %v2397_v10 = vld [vmem:[#allocation6 + $0x10] sm:$0xff]   ;;  %v2398_v11 = vld [vmem:[#allocation6 + $0x18] sm:$0xff]  }
  0x69   :  { %v2399_v12 = vld [vmem:[#allocation6 + $0x20] sm:$0xff]   ;;  %v2400_v13 = vld [vmem:[#allocation6 + $0x28] sm:$0xff]   ;;  %v2401_v14 = vld [vmem:[#allocation6 + $0x30] sm:$0xff]  }
  0x6a   :  { %v2402_v15 = vld [vmem:[#allocation6 + $0x38] sm:$0xff]   ;;  %v2805_v16 = vld [vmem:[#allocation7] sm:$0xff]   ;;  %v2860_v58 = vld [vmem:[#allocation7 + $0x8] sm:$0xff]  }
  0x6b   :  { %2075 = vmatpush3.bf16.msra.mxu0 %v2388_v1  ;;  %2120 = vmatprep.mubr.bf16.mxu1 %v2805_v16  ;;  %v1878_v18 = vld [vmem:[%s3504_s4] ss:$0 sm:$0xff]  ;;  %v2862_v59 = vld [vmem:[#allocation7 + $0x10] sm:$0xff]   ;;  %v2866_v60 = vld [vmem:[#allocation7 + $0x18] sm:$0xff]   ;;  %s345_s4 = sld [smem:[#allocation2]] }
  0x6c   :  { %2076 = vmatprep.subr.bf16.mxu0 %v2389_v2  ;;  %v2868_v61 = vld [vmem:[#allocation7 + $0x20] sm:$0xff]   ;;  %v2872_v62 = vld [vmem:[#allocation7 + $0x28] sm:$0xff]   ;;  %v2874_v63 = vld [vmem:[#allocation7 + $0x30] sm:$0xff]  }
  0x6d   :  { %v2878_v0 = vld [vmem:[#allocation7 + $0x38] sm:$0xff]  }
  0x6f   :  { %2077 = vmatpush3.bf16.msra.mxu0 %v2389_v2  ;;  %v2884_v2 = vstv %s1903_s22 }
  0x70   :  { %2078 = vmatprep.subr.bf16.mxu0 %v2390_v3 }
  0x71   :  { %v2882_v1 = vstv %s345_s4 }
  0x73   :  { %2079 = vmatpush3.bf16.msra.mxu0 %v2390_v3 }
  0x74   :  { %2080 = vmatprep.subr.bf16.mxu0 %v2391_v5 }
  0x77   :  { %2081 = vmatpush3.bf16.msra.mxu0 %v2391_v5 }
  0x78   :  { %2082 = vmatprep.subr.bf16.mxu0 %v2392_v6 }
  0x7b   :  { %2083 = vmatpush3.bf16.msra.mxu0 %v2392_v6 }
  0x7c   :  { %2084 = vmatprep.subr.bf16.mxu0 %v2393_v7 }
  0x7f   :  { %2085 = vmatpush3.bf16.msra.mxu0 %v2393_v7 }
  0x80   :  { %2086 = vmatprep.subr.bf16.mxu0 %v2394_v8 }
  0x83   :  { %2087 = vmatpush3.bf16.msra.mxu0 %v2394_v8 }
  0x86   :  { %2089 = vmatmul.mubr.bf16.vlgmr.msra.gmra.mrb[0].mxu0 %v2396_v9 }
  0x87   :  { %2092 = vmatprep.mubr.bf16.mxu0 %v2397_v10 }
  0x8e   :  { %2093 = vmatmul.mubr.bf16.gmra.mrb[4].mxu0 %v2398_v11 }
  0x8f   :  { %2096 = vmatprep.mubr.bf16.mxu0 %v2399_v12 }
  0x96   :  { %2097 = vmatmul.mubr.bf16.gmra.mrb[8].mxu0 %v2400_v13 }
  0x97   :  { %2100 = vmatprep.mubr.bf16.mxu0 %v2401_v14 }
  0x9e   :  { %2101 = vmatmul.mubr.bf16.gmra.mrb[12].mxu0 %v2402_v15 }
  0x9f   :  { %2152 = vmatprep.mubr.bf16.mxu0 %v2805_v16 }
 0x159   :  { %v2090_v17 = vpop.f32.mrb[0].mxu0 }
 0x15a   :  { %v282_v19 = vpop.f32.mrb[1].mxu0  ;;  %v2812_v21 = vadd.f32 %v2090_v17, %v1878_v18 }
 0x15b   :  { %v2091_v20 = vpop.f32.mrb[2].mxu0  ;;  %v2816_v24 = vadd.f32 %v1878_v18, %v282_v19 }
 0x15c   :  { %v2814_v22 = vadd.f32 %v2091_v20, %v1878_v18  ;;  %v285_v23 = vpop.f32.mrb[3].mxu0  ;;  %v349_v4 = vmul.f32 %v2882_v1, %v2812_v21 }
 0x15d   :  { %v2818_v25 = vadd.f32 %v1878_v18, %v285_v23  ;;  %v347_v7 = vmul.f32 %v2882_v1, %v2816_v24 }
 0x15e   :  { %v364_v26 = vpack.c.bf16 %v2814_v22, %v2812_v21  ;;  %v350_v10 = vmul.f32 %v2882_v1, %v2814_v22 }
 0x15f   :  { %v363_v27 = vpack.c.bf16 %v2818_v25, %v2816_v24  ;;  %v348_v15 = vmul.f32 %v2882_v1, %v2818_v25 }
 0x161   :  { %v2094_v28 = vpop.f32.mrb[4].mxu0  ;;  %2104 = vmatprep.subr.bf16.mxu1 %v363_v27 }
 0x162   :  { %v298_v29 = vpop.f32.mrb[5].mxu0  ;;  %2105 = vmatpush3.bf16.msra.mxu1 %v363_v27  ;;  %v2824_v31 = vadd.f32 %v2094_v28, %v1878_v18 }
 0x163   :  { %v2095_v30 = vpop.f32.mrb[6].mxu0  ;;  %2106 = vmatprep.subr.bf16.mxu1 %v364_v26  ;;  %v2828_v34 = vadd.f32 %v1878_v18, %v298_v29 }
 0x164   :  { %v2826_v32 = vadd.f32 %v2095_v30, %v1878_v18  ;;  %v301_v33 = vpop.f32.mrb[7].mxu0  ;;  %v353_v23 = vmul.f32 %v2882_v1, %v2824_v31 }
 0x165   :  { %v2830_v35 = vadd.f32 %v1878_v18, %v301_v33  ;;  %v351_v25 = vmul.f32 %v2882_v1, %v2828_v34 }
 0x166   :  { %v366_v36 = vpack.c.bf16 %v2826_v32, %v2824_v31  ;;  %2107 = vmatpush3.bf16.msra.mxu1 %v364_v26  ;;  %v354_v29 = vmul.f32 %v2882_v1, %v2826_v32 }
 0x167   :  { %v365_v37 = vpack.c.bf16 %v2830_v35, %v2828_v34  ;;  %v352_v31 = vmul.f32 %v2882_v1, %v2830_v35 }
 0x169   :  { %v2098_v38 = vpop.f32.mrb[8].mxu0  ;;  %2108 = vmatprep.subr.bf16.mxu1 %v365_v37 }
 0x16a   :  { %v314_v39 = vpop.f32.mrb[9].mxu0  ;;  %2109 = vmatpush3.bf16.msra.mxu1 %v365_v37  ;;  %v2836_v41 = vadd.f32 %v2098_v38, %v1878_v18 }
 0x16b   :  { %v2099_v40 = vpop.f32.mrb[10].mxu0  ;;  %2110 = vmatprep.subr.bf16.mxu1 %v366_v36  ;;  %v2840_v44 = vadd.f32 %v1878_v18, %v314_v39 }
 0x16c   :  { %v2838_v42 = vadd.f32 %v2099_v40, %v1878_v18  ;;  %v317_v43 = vpop.f32.mrb[11].mxu0 }
 0x16d   :  { %v2842_v45 = vadd.f32 %v1878_v18, %v317_v43  ;;  %v355_v35 = vmul.f32 %v2882_v1, %v2840_v44 }
 0x16e   :  { %v368_v46 = vpack.c.bf16 %v2838_v42, %v2836_v41  ;;  %2111 = vmatpush3.bf16.msra.mxu1 %v366_v36 }
 0x16f   :  { %v367_v47 = vpack.c.bf16 %v2842_v45, %v2840_v44 }
 0x171   :  { %v2102_v48 = vpop.f32.mrb[12].mxu0  ;;  %2112 = vmatprep.subr.bf16.mxu1 %v367_v47 }
 0x172   :  { %v330_v49 = vpop.f32.mrb[13].mxu0  ;;  %2113 = vmatpush3.bf16.msra.mxu1 %v367_v47  ;;  %v2848_v51 = vadd.f32 %v2102_v48, %v1878_v18 }
 0x173   :  { %v2103_v50 = vpop.f32.mrb[14].mxu0  ;;  %2114 = vmatprep.subr.bf16.mxu1 %v368_v46  ;;  %v2852_v54 = vadd.f32 %v1878_v18, %v330_v49 }
 0x174   :  { %v2850_v52 = vadd.f32 %v2103_v50, %v1878_v18  ;;  %v333_v53 = vpop.f32.mrb[15].mxu0 }
 0x175   :  { %v2854_v55 = vadd.f32 %v1878_v18, %v333_v53  ;;  %v358_v53 = vmul.f32 %v2882_v1, %v2838_v42 }
 0x176   :  { %v370_v56 = vpack.c.bf16 %v2850_v52, %v2848_v51  ;;  %2115 = vmatpush3.bf16.msra.mxu1 %v368_v46  ;;  %v357_v46 = vmul.f32 %v2882_v1, %v2836_v41  ;;  %v356_v41 = vmul.f32 %v2882_v1, %v2842_v45  ;;  %v359_v45 = vmul.f32 %v2882_v1, %v2852_v54 }
 0x177   :  { %v369_v57 = vpack.c.bf16 %v2854_v55, %v2852_v54 }
 0x179   :  { %2116 = vmatprep.subr.bf16.mxu1 %v369_v57 }
 0x17a   :  { %2117 = vmatpush3.bf16.msra.mxu1 %v369_v57 }
 0x17b   :  { %2118 = vmatprep.subr.bf16.mxu1 %v370_v56 }
 0x17e   :  { %2119 = vmatpush3.bf16.msra.mxu1 %v370_v56 }
 0x181   :  { %2121 = vmatmul.mubr.bf16.vlgmr.msra.gmra.mrb[0].mxu1 %v2860_v58 }
 0x182   :  { %2124 = vmatprep.mubr.bf16.mxu1 %v2862_v59 }
 0x189   :  { %2125 = vmatmul.mubr.bf16.gmra.mrb[4].mxu1 %v2866_v60 }
 0x18a   :  { %2128 = vmatprep.mubr.bf16.mxu1 %v2868_v61 }
 0x191   :  { %2129 = vmatmul.mubr.bf16.gmra.mrb[8].mxu1 %v2872_v62 }
 0x192   :  { %2132 = vmatprep.mubr.bf16.mxu1 %v2874_v63 }
 0x199   :  { %2133 = vmatmul.mubr.bf16.gmra.mrb[12].mxu1 %v2878_v0 }
 0x19a   :  { %2184 = vmatprep.mubr.bf16.mxu1 %v2805_v16 }
 0x254   :  { %v2122_v3 = vpop.f32.mrb[0].mxu1 }
 0x255   :  { %v536_v5 = vmul.f32 %v2122_v3, %v2884_v2  ;;  %v469_v6 = vpop.f32.mrb[1].mxu1 }
 0x256   :  { %v534_v8 = vmul.f32 %v2884_v2, %v469_v6  ;;  %v2123_v9 = vpop.f32.mrb[2].mxu1 }
 0x257   :  { %v2894_v11 = vadd.f32 %v536_v5, %v349_v4  ;;  %v537_v12 = vmul.f32 %v2123_v9, %v2884_v2  ;;  %v567_v13 = vpack.c.bf16 %v2123_v9, %v2122_v3  ;;  %v472_v14 = vpop.f32.mrb[3].mxu1  ;;  %v361_v9 = vmul.f32 %v2882_v1, %v2848_v51 }
 0x258   :  { %v2899_v17 = vadd.f32 %v534_v8, %v347_v7  ;;  %v535_v18 = vmul.f32 %v2884_v2, %v472_v14  ;;  %v566_v19 = vpack.c.bf16 %v472_v14, %v469_v6  ;;  %v360_v51 = vmul.f32 %v2882_v1, %v2854_v55  ;;  %v2412_v55 = vld [vmem:[#allocation10 + $0x8] sm:$0xff]  }
 0x259   :  { %v2902_v20 = vadd.f32 %v537_v12, %v350_v10 }
 0x25a   :  { %v2904_v21 = vadd.f32 %v535_v18, %v348_v15  ;;  %2136 = vmatprep.subr.bf16.mxu0 %v566_v19  ;;  %v362_v15 = vmul.f32 %v2882_v1, %v2850_v52  ;;  %v2411_v52 = vld [vmem:[#allocation10] sm:$0xff]   ;;  %v2413_v1 = vld [vmem:[#allocation10 + $0x10] sm:$0xff]  }
 0x25b   :  { %2137 = vmatpush3.bf16.msra.mxu0 %v566_v19 }
 0x25c   :  { %v2126_v22 = vpop.f32.mrb[4].mxu1  ;;  %2138 = vmatprep.subr.bf16.mxu0 %v567_v13 }
 0x25d   :  { %v540_v24 = vmul.f32 %v2126_v22, %v2884_v2  ;;  %v485_v26 = vpop.f32.mrb[5].mxu1 }
 0x25e   :  { %v538_v27 = vmul.f32 %v2884_v2, %v485_v26  ;;  %v2127_v28 = vpop.f32.mrb[6].mxu1 }
 0x25f   :  { %v2914_v30 = vadd.f32 %v540_v24, %v353_v23  ;;  %v541_v33 = vmul.f32 %v2127_v28, %v2884_v2  ;;  %v569_v36 = vpack.c.bf16 %v2127_v28, %v2126_v22  ;;  %v488_v37 = vpop.f32.mrb[7].mxu1  ;;  %2139 = vmatpush3.bf16.msra.mxu0 %v567_v13  ;;  %v2415_v28 = vld [vmem:[#allocation10 + $0x20] sm:$0xff]  }
 0x260   :  { %v2919_v38 = vadd.f32 %v538_v27, %v351_v25  ;;  %v539_v34 = vmul.f32 %v2884_v2, %v488_v37  ;;  %v568_v39 = vpack.c.bf16 %v488_v37, %v485_v26 }
 0x261   :  { %v2922_v40 = vadd.f32 %v541_v33, %v354_v29  ;;  %v2973_v29 = vstv %s1904_s14 }
 0x262   :  { %v2924_v43 = vadd.f32 %v539_v34, %v352_v31  ;;  %2140 = vmatprep.subr.bf16.mxu0 %v568_v39 }
 0x263   :  { %2141 = vmatpush3.bf16.msra.mxu0 %v568_v39 }
 0x264   :  { %v2130_v32 = vpop.f32.mrb[8].mxu1  ;;  %2142 = vmatprep.subr.bf16.mxu0 %v569_v36 }
 0x265   :  { %v544_v47 = vmul.f32 %v2130_v32, %v2884_v2  ;;  %v501_v48 = vpop.f32.mrb[9].mxu1 }
 0x266   :  { %v542_v49 = vmul.f32 %v2884_v2, %v501_v48  ;;  %v2131_v50 = vpop.f32.mrb[10].mxu1 }
 0x267   :  { %v2934_v56 = vadd.f32 %v544_v47, %v357_v46  ;;  %v545_v57 = vmul.f32 %v2131_v50, %v2884_v2  ;;  %v571_v3 = vpack.c.bf16 %v2131_v50, %v2130_v32  ;;  %v504_v4 = vpop.f32.mrb[11].mxu1  ;;  %2143 = vmatpush3.bf16.msra.mxu0 %v569_v36 }
 0x268   :  { %v2939_v5 = vadd.f32 %v542_v49, %v355_v35  ;;  %v543_v44 = vmul.f32 %v2884_v2, %v504_v4  ;;  %v570_v6 = vpack.c.bf16 %v504_v4, %v501_v48 }
 0x269   :  { %v2942_v7 = vadd.f32 %v545_v57, %v358_v53 }
 0x26a   :  { %v2944_v8 = vadd.f32 %v543_v44, %v356_v41  ;;  %2144 = vmatprep.subr.bf16.mxu0 %v570_v6 }
 0x26b   :  { %2145 = vmatpush3.bf16.msra.mxu0 %v570_v6 }
 0x26c   :  { %v2134_v42 = vpop.f32.mrb[12].mxu1  ;;  %2146 = vmatprep.subr.bf16.mxu0 %v571_v3 }
 0x26d   :  { %v548_v10 = vmul.f32 %v2134_v42, %v2884_v2  ;;  %v517_v12 = vpop.f32.mrb[13].mxu1 }
 0x26e   :  { %v546_v13 = vmul.f32 %v2884_v2, %v517_v12  ;;  %v2135_v14 = vpop.f32.mrb[14].mxu1 }
 0x26f   :  { %v2954_v18 = vadd.f32 %v548_v10, %v361_v9  ;;  %v549_v19 = vmul.f32 %v2135_v14, %v2884_v2  ;;  %v573_v22 = vpack.c.bf16 %v2135_v14, %v2134_v42  ;;  %v520_v23 = vpop.f32.mrb[15].mxu1  ;;  %2147 = vmatpush3.bf16.msra.mxu0 %v571_v3 }
 0x270   :  { %v2959_v24 = vadd.f32 %v546_v13, %v359_v45  ;;  %v547_v54 = vmul.f32 %v2884_v2, %v520_v23  ;;  %v572_v26 = vpack.c.bf16 %v520_v23, %v517_v12  ;;  %v2414_v2 = vld [vmem:[#allocation10 + $0x18] sm:$0xff]  }
 0x271   :  { %v2962_v25 = vadd.f32 %v549_v19, %v362_v15 }
 0x272   :  { %v2964_v27 = vadd.f32 %v547_v54, %v360_v51  ;;  %2148 = vmatprep.subr.bf16.mxu0 %v572_v26 }
 0x273   :  { %2149 = vmatpush3.bf16.msra.mxu0 %v572_v26 }
 0x274   :  { %2150 = vmatprep.subr.bf16.mxu0 %v573_v22 }
 0x277   :  { %2151 = vmatpush3.bf16.msra.mxu0 %v573_v22 }
 0x278   :  { %2200 = vmatprep.subr.bf16.mxu0 %v2411_v52 }
 0x27a   :  { %2153 = vmatmul.mubr.bf16.vlgmr.msra.gmra.mrb[16].mxu0 %v2860_v58 }
 0x27b   :  { %2156 = vmatprep.mubr.bf16.mxu0 %v2862_v59  ;;  %2201 = vmatpush3.bf16.msra.mxu0 %v2411_v52 }
 0x27c   :  { %2202 = vmatprep.subr.bf16.mxu0 %v2412_v55 }
 0x27f   :  { %2203 = vmatpush3.bf16.msra.mxu0 %v2412_v55 }
 0x280   :  { %2204 = vmatprep.subr.bf16.mxu0 %v2413_v1 }
 0x282   :  { %2157 = vmatmul.mubr.bf16.gmra.mrb[20].mxu0 %v2866_v60 }
 0x283   :  { %2160 = vmatprep.mubr.bf16.mxu0 %v2868_v61  ;;  %2205 = vmatpush3.bf16.msra.mxu0 %v2413_v1 }
 0x284   :  { %2206 = vmatprep.subr.bf16.mxu0 %v2414_v2 }
 0x287   :  { %2207 = vmatpush3.bf16.msra.mxu0 %v2414_v2 }
 0x288   :  { %2208 = vmatprep.subr.bf16.mxu0 %v2415_v28 }
 0x28a   :  { %2161 = vmatmul.mubr.bf16.gmra.mrb[24].mxu0 %v2872_v62 }
 0x28b   :  { %2164 = vmatprep.mubr.bf16.mxu0 %v2874_v63  ;;  %2209 = vmatpush3.bf16.msra.mxu0 %v2415_v28 }
 0x292   :  { %2165 = vmatmul.mubr.bf16.gmra.mrb[28].mxu0 %v2878_v0 }
 0x34d   :  { %v2154_v33 = vpop.f32.mrb[16].mxu0 }
 0x34e   :  { %v675_v36 = vmul.f32 %v2154_v33, %v2973_v29  ;;  %v608_v37 = vpop.f32.mrb[17].mxu0 }
 0x34f   :  { %v673_v31 = vmul.f32 %v2973_v29, %v608_v37  ;;  %v2155_v34 = vpop.f32.mrb[18].mxu0 }
 0x350   :  { %v2978_v39 = vadd.f32 %v675_v36, %v2894_v11  ;;  %v676_v32 = vmul.f32 %v2155_v34, %v2973_v29  ;;  %v706_v46 = vpack.c.bf16 %v2155_v34, %v2154_v33  ;;  %v611_v47 = vpop.f32.mrb[19].mxu0 }
 0x351   :  { %v2982_v48 = vadd.f32 %v673_v31, %v2899_v17  ;;  %v674_v35 = vmul.f32 %v2973_v29, %v611_v47  ;;  %v705_v49 = vpack.c.bf16 %v611_v47, %v608_v37 }
 0x352   :  { %v2986_v50 = vadd.f32 %v676_v32, %v2902_v20 }
 0x353   :  { %v2989_v53 = vadd.f32 %v674_v35, %v2904_v21  ;;  %2168 = vmatprep.subr.bf16.mxu1 %v705_v49 }
 0x354   :  { %2169 = vmatpush3.bf16.msra.mxu1 %v705_v49 }
 0x355   :  { %v2158_v11 = vpop.f32.mrb[20].mxu0  ;;  %2170 = vmatprep.subr.bf16.mxu1 %v706_v46 }
 0x356   :  { %v679_v57 = vmul.f32 %v2158_v11, %v2973_v29  ;;  %v624_v3 = vpop.f32.mrb[21].mxu0 }
 0x357   :  { %v677_v4 = vmul.f32 %v2973_v29, %v624_v3  ;;  %v2159_v17 = vpop.f32.mrb[22].mxu0 }
 0x358   :  { %v2994_v41 = vadd.f32 %v679_v57, %v2914_v30  ;;  %v680_v44 = vmul.f32 %v2159_v17, %v2973_v29  ;;  %v708_v20 = vpack.c.bf16 %v2159_v17, %v2158_v11  ;;  %v627_v6 = vpop.f32.mrb[23].mxu0  ;;  %2171 = vmatpush3.bf16.msra.mxu1 %v706_v46 }
 0x359   :  { %v2998_v21 = vadd.f32 %v677_v4, %v2919_v38  ;;  %v678_v42 = vmul.f32 %v2973_v29, %v627_v6  ;;  %v707_v9 = vpack.c.bf16 %v627_v6, %v624_v3 }
 0x35a   :  { %v3002_v10 = vadd.f32 %v680_v44, %v2922_v40 }
 0x35b   :  { %v3005_v12 = vadd.f32 %v678_v42, %v2924_v43  ;;  %2172 = vmatprep.subr.bf16.mxu1 %v707_v9 }
 0x35c   :  { %2173 = vmatpush3.bf16.msra.mxu1 %v707_v9 }
 0x35d   :  { %v2162_v30 = vpop.f32.mrb[24].mxu0  ;;  %2174 = vmatprep.subr.bf16.mxu1 %v708_v20 }
 0x35e   :  { %v683_v45 = vmul.f32 %v2162_v30, %v2973_v29  ;;  %v640_v13 = vpop.f32.mrb[25].mxu0 }
 0x35f   :  { %v681_v14 = vmul.f32 %v2973_v29, %v640_v13  ;;  %v2163_v38 = vpop.f32.mrb[26].mxu0 }
 0x360   :  { %v3010_v15 = vadd.f32 %v683_v45, %v2934_v56  ;;  %v684_v19 = vmul.f32 %v2163_v38, %v2973_v29  ;;  %v710_v40 = vpack.c.bf16 %v2163_v38, %v2162_v30  ;;  %v643_v22 = vpop.f32.mrb[27].mxu0  ;;  %2175 = vmatpush3.bf16.msra.mxu1 %v708_v20 }
 0x361   :  { %v3014_v43 = vadd.f32 %v681_v14, %v2939_v5  ;;  %v682_v23 = vmul.f32 %v2973_v29, %v643_v22  ;;  %v709_v51 = vpack.c.bf16 %v643_v22, %v640_v13 }
 0x362   :  { %v3018_v54 = vadd.f32 %v684_v19, %v2942_v7 }
 0x363   :  { %v3021_v26 = vadd.f32 %v682_v23, %v2944_v8  ;;  %2176 = vmatprep.subr.bf16.mxu1 %v709_v51 }
 0x364   :  { %2177 = vmatpush3.bf16.msra.mxu1 %v709_v51 }
 0x365   :  { %v2166_v56 = vpop.f32.mrb[28].mxu0  ;;  %2178 = vmatprep.subr.bf16.mxu1 %v710_v40 }
 0x366   :  { %v687_v52 = vmul.f32 %v2166_v56, %v2973_v29  ;;  %v656_v55 = vpop.f32.mrb[29].mxu0 }
 0x367   :  { %v685_v1 = vmul.f32 %v2973_v29, %v656_v55  ;;  %v2167_v5 = vpop.f32.mrb[30].mxu0 }
 0x368   :  { %v3026_v2 = vadd.f32 %v687_v52, %v2954_v18  ;;  %v688_v28 = vmul.f32 %v2167_v5, %v2973_v29  ;;  %v712_v7 = vpack.c.bf16 %v2167_v5, %v2166_v56  ;;  %v659_v33 = vpop.f32.mrb[31].mxu0  ;;  %2179 = vmatpush3.bf16.msra.mxu1 %v710_v40  ;;  %v2416_v18 = vld [vmem:[#allocation10 + $0x28] sm:$0xff]  }
 0x369   :  { %v3030_v8 = vadd.f32 %v685_v1, %v2959_v24  ;;  %v686_v36 = vmul.f32 %v2973_v29, %v659_v33  ;;  %v711_v37 = vpack.c.bf16 %v659_v33, %v656_v55  ;;  %2210 = vmatprep.subr.bf16.mxu0 %v2416_v18  ;;  %v2417_v24 = vld [vmem:[#allocation10 + $0x30] sm:$0xff]  }
 0x36a   :  { %v3034_v31 = vadd.f32 %v688_v28, %v2962_v25  ;;  %2211 = vmatpush3.bf16.msra.mxu0 %v2416_v18  ;;  %v2418_v25 = vld [vmem:[#allocation10 + $0x38] sm:$0xff]  }
 0x36b   :  { %v3037_v34 = vadd.f32 %v686_v36, %v2964_v27  ;;  %2180 = vmatprep.subr.bf16.mxu1 %v711_v37  ;;  %2212 = vmatprep.subr.bf16.mxu0 %v2417_v24  ;;  %v3047_v27 = vstv %s1905_s15 }
 0x36c   :  { %2181 = vmatpush3.bf16.msra.mxu1 %v711_v37 }
 0x36d   :  { %2182 = vmatprep.subr.bf16.mxu1 %v712_v7 }
 0x36e   :  { %2213 = vmatpush3.bf16.msra.mxu0 %v2417_v24 }
 0x36f   :  { %2214 = vmatprep.subr.bf16.mxu0 %v2418_v25 }
 0x370   :  { %2183 = vmatpush3.bf16.msra.mxu1 %v712_v7 }
 0x372   :  { %2215 = vmatpush3.bf16.msra.mxu0 %v2418_v25 }
 0x373   :  { %2185 = vmatmul.mubr.bf16.vlgmr.msra.gmra.mrb[16].mxu1 %v2860_v58 }
 0x374   :  { %2188 = vmatprep.mubr.bf16.mxu1 %v2862_v59 }
 0x37b   :  { %2189 = vmatmul.mubr.bf16.gmra.mrb[20].mxu1 %v2866_v60 }
 0x37c   :  { %2192 = vmatprep.mubr.bf16.mxu1 %v2868_v61 }
 0x383   :  { %2193 = vmatmul.mubr.bf16.gmra.mrb[24].mxu1 %v2872_v62 }
 0x384   :  { %2196 = vmatprep.mubr.bf16.mxu1 %v2874_v63 }
 0x38b   :  { %2197 = vmatmul.mubr.bf16.gmra.mrb[28].mxu1 %v2878_v0 }
 0x38c   :  { %2248 = vmatprep.mubr.bf16.mxu1 %v2805_v16 }
 0x446   :  { %v2186_v29 = vpop.f32.mrb[16].mxu1 }
 0x447   :  { %v814_v32 = vmul.f32 %v2186_v29, %v3047_v27  ;;  %v747_v46 = vpop.f32.mrb[17].mxu1 }
 0x448   :  { %v812_v47 = vmul.f32 %v3047_v27, %v747_v46  ;;  %v2187_v35 = vpop.f32.mrb[18].mxu1 }
 0x449   :  { %v830_v49 = vadd.f32 %v814_v32, %v2978_v39  ;;  %v815_v11 = vmul.f32 %v2187_v35, %v3047_v27  ;;  %v750_v57 = vpop.f32.mrb[19].mxu1 }
 0x44a   :  { %v828_v3 = vadd.f32 %v812_v47, %v2982_v48  ;;  %v813_v4 = vmul.f32 %v3047_v27, %v750_v57 }
 0x44b   :  { %v831_v17 = vadd.f32 %v815_v11, %v2986_v50  ;;  %v846_v20 = vmax.f32 %v830_v49, 0.0 }
 0x44c   :  { %v829_v44 = vadd.f32 %v813_v4, %v2989_v53  ;;  %v844_v42 = vmax.f32 %v828_v3, 0.0 }
 0x44d   :  { %v847_v6 = vmax.f32 %v831_v17, 0.0 }
 0x44e   :  { %v845_v9 = vmax.f32 %v829_v44, 0.0  ;;  %v2190_v30 = vpop.f32.mrb[20].mxu1 }
 0x44f   :  { %v861_v45 = vpack.c.bf16 %v847_v6, %v846_v20  ;;  %v818_v13 = vmul.f32 %v2190_v30, %v3047_v27  ;;  %v763_v39 = vpop.f32.mrb[21].mxu1 }
 0x450   :  { %v816_v14 = vmul.f32 %v3047_v27, %v763_v39  ;;  %v2191_v38 = vpop.f32.mrb[22].mxu1  ;;  %v860_v19 = vpack.c.bf16 %v845_v9, %v844_v42 }
 0x451   :  { %v834_v48 = vadd.f32 %v818_v13, %v2994_v41  ;;  %v819_v40 = vmul.f32 %v2191_v38, %v3047_v27  ;;  %v766_v50 = vpop.f32.mrb[23].mxu1 }
 0x452   :  { %v832_v53 = vadd.f32 %v816_v14, %v2998_v21  ;;  %v817_v22 = vmul.f32 %v3047_v27, %v766_v50  ;;  %2216 = vmatprep.mubr.bf16.mxu0 %v860_v19 }
 0x453   :  { %v835_v23 = vadd.f32 %v819_v40, %v3002_v10  ;;  %2217 = vmatmul.mubr.bf16.vlgmr.msra.gmra.mrb[32].mxu0 %v861_v45  ;;  %v850_v56 = vmax.f32 %v834_v48, 0.0 }
 0x454   :  { %v833_v51 = vadd.f32 %v817_v22, %v3005_v12  ;;  %v848_v55 = vmax.f32 %v832_v53, 0.0 }
 0x455   :  { %v851_v52 = vmax.f32 %v835_v23, 0.0 }
 0x456   :  { %v849_v1 = vmax.f32 %v833_v51, 0.0  ;;  %v2194_v5 = vpop.f32.mrb[24].mxu1 }
 0x457   :  { %v822_v41 = vmul.f32 %v2194_v5, %v3047_v27  ;;  %v779_v28 = vpop.f32.mrb[25].mxu1  ;;  %v863_v7 = vpack.c.bf16 %v851_v52, %v850_v56 }
 0x458   :  { %v820_v33 = vmul.f32 %v3047_v27, %v779_v28  ;;  %v2195_v21 = vpop.f32.mrb[26].mxu1  ;;  %v862_v36 = vpack.c.bf16 %v849_v1, %v848_v55 }
 0x459   :  { %v838_v37 = vadd.f32 %v822_v41, %v3010_v15  ;;  %v823_v10 = vmul.f32 %v2195_v21, %v3047_v27  ;;  %v782_v18 = vpop.f32.mrb[27].mxu1 }
 0x45a   :  { %v836_v12 = vadd.f32 %v820_v33, %v3014_v43  ;;  %v821_v24 = vmul.f32 %v3047_v27, %v782_v18  ;;  %2220 = vmatprep.mubr.bf16.mxu0 %v862_v36 }
 0x45b   :  { %v839_v25 = vadd.f32 %v823_v10, %v3018_v54  ;;  %2221 = vmatmul.mubr.bf16.gmra.mrb[36].mxu0 %v863_v7  ;;  %v854_v32 = vmax.f32 %v838_v37, 0.0 }
 0x45c   :  { %v837_v29 = vadd.f32 %v821_v24, %v3021_v26  ;;  %v852_v47 = vmax.f32 %v836_v12, 0.0 }
 0x45d   :  { %v855_v46 = vmax.f32 %v839_v25, 0.0 }
 0x45e   :  { %v853_v35 = vmax.f32 %v837_v29, 0.0  ;;  %v2198_v49 = vpop.f32.mrb[28].mxu1 }
 0x45f   :  { %v826_v15 = vmul.f32 %v2198_v49, %v3047_v27  ;;  %v795_v11 = vpop.f32.mrb[29].mxu1  ;;  %v865_v57 = vpack.c.bf16 %v855_v46, %v854_v32 }
 0x460   :  { %v824_v3 = vmul.f32 %v3047_v27, %v795_v11  ;;  %v2199_v43 = vpop.f32.mrb[30].mxu1  ;;  %v864_v4 = vpack.c.bf16 %v853_v35, %v852_v47 }
 0x461   :  { %v842_v17 = vadd.f32 %v826_v15, %v3026_v2  ;;  %v827_v54 = vmul.f32 %v2199_v43, %v3047_v27  ;;  %v798_v44 = vpop.f32.mrb[31].mxu1 }
 0x462   :  { %v840_v26 = vadd.f32 %v824_v3, %v3030_v8  ;;  %v825_v20 = vmul.f32 %v3047_v27, %v798_v44  ;;  %2224 = vmatprep.mubr.bf16.mxu0 %v864_v4  ;;  %v1906_v8 = vld [vmem:[%s3506_s6] ss:$0 sm:$0xff]  ;;  %s1915_s6 = sld [smem:[#allocation2 + $0x80]]  ;;  %v3143_v4 = vstv %s1916_s18 }
 0x463   :  { %v843_v6 = vadd.f32 %v827_v54, %v3034_v31  ;;  %2225 = vmatmul.mubr.bf16.gmra.mrb[40].mxu0 %v865_v57  ;;  %v858_v9 = vmax.f32 %v842_v17, 0.0 }
 0x464   :  { %v841_v42 = vadd.f32 %v825_v20, %v3037_v34  ;;  %v856_v45 = vmax.f32 %v840_v26, 0.0 }
 0x465   :  { %v859_v30 = vmax.f32 %v843_v6, 0.0 }
 0x466   :  { %v857_v13 = vmax.f32 %v841_v42, 0.0 }
 0x467   :  { %v867_v39 = vpack.c.bf16 %v859_v30, %v858_v9 }
 0x468   :  { %v866_v14 = vpack.c.bf16 %v857_v13, %v856_v45  ;;  %v3141_v43 = vstv %s1915_s6 }
 0x46a   :  { %2228 = vmatprep.mubr.bf16.mxu0 %v866_v14 }
 0x46b   :  { %2229 = vmatmul.mubr.bf16.gmra.mrb[44].mxu0 %v867_v39 }
 0x46c   :  { %2280 = vmatprep.mubr.bf16.mxu0 %v2805_v16 }
 0x526   :  { %v2218_v2 = vpop.f32.mrb[32].mxu0 }
 0x527   :  { %v973_v27 = vpop.f32.mrb[33].mxu0  ;;  %v3085_v38 = vadd.f32 %v2218_v2, %v1906_v8 }
 0x528   :  { %v2219_v31 = vpop.f32.mrb[34].mxu0  ;;  %v3089_v48 = vadd.f32 %v1906_v8, %v973_v27 }
 0x529   :  { %v3087_v34 = vadd.f32 %v2219_v31, %v1906_v8  ;;  %v976_v19 = vpop.f32.mrb[35].mxu0  ;;  %v1040_v54 = vmul.f32 %v3141_v43, %v3085_v38 }
 0x52a   :  { %v3091_v40 = vadd.f32 %v1906_v8, %v976_v19  ;;  %v1038_v20 = vmul.f32 %v3141_v43, %v3089_v48 }
 0x52b   :  { %v1055_v50 = vpack.c.bf16 %v3087_v34, %v3085_v38 }
 0x52c   :  { %v1054_v53 = vpack.c.bf16 %v3091_v40, %v3089_v48  ;;  %v1039_v39 = vmul.f32 %v3141_v43, %v3091_v40 }
 0x52e   :  { %v2222_v22 = vpop.f32.mrb[36].mxu0  ;;  %2232 = vmatprep.subr.bf16.mxu1 %v1054_v53 }
 0x52f   :  { %v989_v23 = vpop.f32.mrb[37].mxu0  ;;  %2233 = vmatpush3.bf16.msra.mxu1 %v1054_v53  ;;  %v3097_v56 = vadd.f32 %v2222_v22, %v1906_v8 }
 0x530   :  { %v2223_v51 = vpop.f32.mrb[38].mxu0  ;;  %2234 = vmatprep.subr.bf16.mxu1 %v1055_v50  ;;  %v3101_v1 = vadd.f32 %v1906_v8, %v989_v23 }
 0x531   :  { %v3099_v52 = vadd.f32 %v2223_v51, %v1906_v8  ;;  %v992_v55 = vpop.f32.mrb[39].mxu0 }
 0x532   :  { %v3103_v5 = vadd.f32 %v1906_v8, %v992_v55  ;;  %v1042_v40 = vmul.f32 %v3141_v43, %v3101_v1 }
 0x533   :  { %v1057_v41 = vpack.c.bf16 %v3099_v52, %v3097_v56  ;;  %2235 = vmatpush3.bf16.msra.mxu1 %v1055_v50  ;;  %v1045_v22 = vmul.f32 %v3141_v43, %v3099_v52 }
 0x534   :  { %v1056_v28 = vpack.c.bf16 %v3103_v5, %v3101_v1 }
 0x536   :  { %v2226_v7 = vpop.f32.mrb[40].mxu0  ;;  %2236 = vmatprep.subr.bf16.mxu1 %v1056_v28 }
 0x537   :  { %v1005_v33 = vpop.f32.mrb[41].mxu0  ;;  %2237 = vmatpush3.bf16.msra.mxu1 %v1056_v28  ;;  %v3109_v36 = vadd.f32 %v2226_v7, %v1906_v8 }
 0x538   :  { %v2227_v21 = vpop.f32.mrb[42].mxu0  ;;  %2238 = vmatprep.subr.bf16.mxu1 %v1057_v41  ;;  %v3113_v18 = vadd.f32 %v1906_v8, %v1005_v33 }
 0x539   :  { %v3111_v37 = vadd.f32 %v2227_v21, %v1906_v8  ;;  %v1008_v10 = vpop.f32.mrb[43].mxu0 }
 0x53a   :  { %v3115_v12 = vadd.f32 %v1906_v8, %v1008_v10  ;;  %v1048_v10 = vmul.f32 %v3141_v43, %v3109_v36 }
 0x53b   :  { %v1059_v24 = vpack.c.bf16 %v3111_v37, %v3109_v36  ;;  %2239 = vmatpush3.bf16.msra.mxu1 %v1057_v41 }
 0x53c   :  { %v1058_v25 = vpack.c.bf16 %v3115_v12, %v3113_v18  ;;  %v1047_v36 = vmul.f32 %v3141_v43, %v3115_v12 }
 0x53e   :  { %v2230_v29 = vpop.f32.mrb[44].mxu0  ;;  %2240 = vmatprep.subr.bf16.mxu1 %v1058_v25 }
 0x53f   :  { %v1021_v32 = vpop.f32.mrb[45].mxu0  ;;  %2241 = vmatpush3.bf16.msra.mxu1 %v1058_v25  ;;  %v3121_v47 = vadd.f32 %v2230_v29, %v1906_v8 }
 0x540   :  { %v2231_v46 = vpop.f32.mrb[46].mxu0  ;;  %2242 = vmatprep.subr.bf16.mxu1 %v1059_v24  ;;  %v3125_v15 = vadd.f32 %v1906_v8, %v1021_v32 }
 0x541   :  { %v3123_v35 = vadd.f32 %v2231_v46, %v1906_v8  ;;  %v1024_v49 = vpop.f32.mrb[47].mxu0  ;;  %v1049_v46 = vmul.f32 %v3141_v43, %v3111_v37 }
 0x542   :  { %v3127_v11 = vadd.f32 %v1906_v8, %v1024_v49  ;;  %v1050_v12 = vmul.f32 %v3141_v43, %v3125_v15 }
 0x543   :  { %v1061_v57 = vpack.c.bf16 %v3123_v35, %v3121_v47  ;;  %2243 = vmatpush3.bf16.msra.mxu1 %v1059_v24 }
 0x544   :  { %v1060_v3 = vpack.c.bf16 %v3127_v11, %v3125_v15 }
 0x546   :  { %2244 = vmatprep.subr.bf16.mxu1 %v1060_v3 }
 0x547   :  { %2245 = vmatpush3.bf16.msra.mxu1 %v1060_v3 }
 0x548   :  { %2246 = vmatprep.subr.bf16.mxu1 %v1061_v57 }
 0x54b   :  { %2247 = vmatpush3.bf16.msra.mxu1 %v1061_v57 }
 0x54e   :  { %2249 = vmatmul.mubr.bf16.vlgmr.msra.gmra.mrb[32].mxu1 %v2860_v58 }
 0x54f   :  { %2252 = vmatprep.mubr.bf16.mxu1 %v2862_v59 }
 0x556   :  { %2253 = vmatmul.mubr.bf16.gmra.mrb[36].mxu1 %v2866_v60 }
 0x557   :  { %2256 = vmatprep.mubr.bf16.mxu1 %v2868_v61 }
 0x55e   :  { %2257 = vmatmul.mubr.bf16.gmra.mrb[40].mxu1 %v2872_v62 }
 0x55f   :  { %2260 = vmatprep.mubr.bf16.mxu1 %v2874_v63 }
 0x566   :  { %2261 = vmatmul.mubr.bf16.gmra.mrb[44].mxu1 %v2878_v0 }
 0x567   :  { %2312 = vmatprep.mubr.bf16.mxu1 %v2805_v16  ;;  %v1041_v16 = vmul.f32 %v3141_v43, %v3087_v34  ;;  %v1044_v34 = vmul.f32 %v3141_v43, %v3097_v56  ;;  %v1043_v56 = vmul.f32 %v3141_v43, %v3103_v5  ;;  %v1046_v5 = vmul.f32 %v3141_v43, %v3113_v18 }
 0x621   :  { %v2250_v17 = vpop.f32.mrb[32].mxu1 }
 0x622   :  { %v1163_v44 = vmul.f32 %v2250_v17, %v3143_v4  ;;  %v1096_v26 = vpop.f32.mrb[33].mxu1 }
 0x623   :  { %v1161_v6 = vmul.f32 %v3143_v4, %v1096_v26  ;;  %v2251_v42 = vpop.f32.mrb[34].mxu1 }
 0x624   :  { %v3153_v9 = vadd.f32 %v1163_v44, %v1040_v54  ;;  %v1164_v30 = vmul.f32 %v2251_v42, %v3143_v4  ;;  %v1194_v45 = vpack.c.bf16 %v2251_v42, %v2250_v17  ;;  %v1099_v13 = vpop.f32.mrb[35].mxu1 }
 0x625   :  { %v3158_v14 = vadd.f32 %v1161_v6, %v1038_v20  ;;  %v1162_v2 = vmul.f32 %v3143_v4, %v1099_v13  ;;  %v1193_v8 = vpack.c.bf16 %v1099_v13, %v1096_v26  ;;  %v1052_v6 = vmul.f32 %v3141_v43, %v3121_v47 }
 0x626   :  { %v3161_v27 = vadd.f32 %v1164_v30, %v1041_v16  ;;  %v1053_v13 = vmul.f32 %v3141_v43, %v3123_v35  ;;  %v1051_v47 = vmul.f32 %v3141_v43, %v3127_v11  ;;  %v3232_v35 = vld [vmem:[#allocation12] sm:$0xff]   ;;  %v3234_v11 = vld [vmem:[#allocation12 + $0x8] sm:$0xff]  }
 0x627   :  { %v3163_v31 = vadd.f32 %v1162_v2, %v1039_v39  ;;  %2264 = vmatprep.subr.bf16.mxu0 %v1193_v8 }
 0x628   :  { %2265 = vmatpush3.bf16.msra.mxu0 %v1193_v8 }
 0x629   :  { %v2254_v38 = vpop.f32.mrb[36].mxu1  ;;  %2266 = vmatprep.subr.bf16.mxu0 %v1194_v45 }
 0x62a   :  { %v1167_v19 = vmul.f32 %v2254_v38, %v3143_v4  ;;  %v1112_v48 = vpop.f32.mrb[37].mxu1 }
 0x62b   :  { %v1165_v50 = vmul.f32 %v3143_v4, %v1112_v48  ;;  %v2255_v53 = vpop.f32.mrb[38].mxu1 }
 0x62c   :  { %v3173_v23 = vadd.f32 %v1167_v19, %v1044_v34  ;;  %v1168_v51 = vmul.f32 %v2255_v53, %v3143_v4  ;;  %v1196_v55 = vpack.c.bf16 %v2255_v53, %v2254_v38  ;;  %v1115_v41 = vpop.f32.mrb[39].mxu1  ;;  %2267 = vmatpush3.bf16.msra.mxu0 %v1194_v45 }
 0x62d   :  { %v3178_v28 = vadd.f32 %v1165_v50, %v1042_v40  ;;  %v1166_v1 = vmul.f32 %v3143_v4, %v1115_v41  ;;  %v1195_v7 = vpack.c.bf16 %v1115_v41, %v1112_v48 }
 0x62e   :  { %v3181_v33 = vadd.f32 %v1168_v51, %v1045_v22 }
 0x62f   :  { %v3183_v21 = vadd.f32 %v1166_v1, %v1043_v56  ;;  %2268 = vmatprep.subr.bf16.mxu0 %v1195_v7 }
 0x630   :  { %2269 = vmatpush3.bf16.msra.mxu0 %v1195_v7 }
 0x631   :  { %v2258_v52 = vpop.f32.mrb[40].mxu1  ;;  %2270 = vmatprep.subr.bf16.mxu0 %v1196_v55 }
 0x632   :  { %v1171_v24 = vmul.f32 %v2258_v52, %v3143_v4  ;;  %v1128_v25 = vpop.f32.mrb[41].mxu1 }
 0x633   :  { %v1169_v29 = vmul.f32 %v3143_v4, %v1128_v25  ;;  %v2259_v32 = vpop.f32.mrb[42].mxu1 }
 0x634   :  { %v3193_v49 = vadd.f32 %v1171_v24, %v1048_v10  ;;  %v1172_v57 = vmul.f32 %v2259_v32, %v3143_v4  ;;  %v1198_v3 = vpack.c.bf16 %v2259_v32, %v2258_v52  ;;  %v1131_v17 = vpop.f32.mrb[43].mxu1  ;;  %2271 = vmatpush3.bf16.msra.mxu0 %v1196_v55 }
 0x635   :  { %v3198_v54 = vadd.f32 %v1169_v29, %v1046_v5  ;;  %v1170_v18 = vmul.f32 %v3143_v4, %v1131_v17  ;;  %v1197_v44 = vpack.c.bf16 %v1131_v17, %v1128_v25 }
 0x636   :  { %v3201_v26 = vadd.f32 %v1172_v57, %v1049_v46 }
 0x637   :  { %v3203_v20 = vadd.f32 %v1170_v18, %v1047_v36  ;;  %2272 = vmatprep.subr.bf16.mxu0 %v1197_v44 }
 0x638   :  { %2273 = vmatpush3.bf16.msra.mxu0 %v1197_v44 }
 0x639   :  { %v2262_v37 = vpop.f32.mrb[44].mxu1  ;;  %2274 = vmatprep.subr.bf16.mxu0 %v1198_v3 }
 0x63a   :  { %v1175_v42 = vmul.f32 %v2262_v37, %v3143_v4  ;;  %v1144_v16 = vpop.f32.mrb[45].mxu1 }
 0x63b   :  { %v1173_v30 = vmul.f32 %v3143_v4, %v1144_v16  ;;  %v2263_v45 = vpop.f32.mrb[46].mxu1 }
 0x63c   :  { %v3213_v39 = vadd.f32 %v1175_v42, %v1052_v6  ;;  %v1176_v2 = vmul.f32 %v2263_v45, %v3143_v4  ;;  %v1200_v8 = vpack.c.bf16 %v2263_v45, %v2262_v37  ;;  %v1147_v38 = vpop.f32.mrb[47].mxu1  ;;  %2275 = vmatpush3.bf16.msra.mxu0 %v1198_v3 }
 0x63d   :  { %v3218_v34 = vadd.f32 %v1173_v30, %v1050_v12  ;;  %v1174_v15 = vmul.f32 %v3143_v4, %v1147_v38  ;;  %v1199_v19 = vpack.c.bf16 %v1147_v38, %v1144_v16 }
 0x63e   :  { %v3221_v48 = vadd.f32 %v1176_v2, %v1053_v13 }
 0x63f   :  { %v3223_v40 = vadd.f32 %v1174_v15, %v1051_v47  ;;  %2276 = vmatprep.subr.bf16.mxu0 %v1199_v19 }
 0x640   :  { %2277 = vmatpush3.bf16.msra.mxu0 %v1199_v19 }
 0x641   :  { %2278 = vmatprep.subr.bf16.mxu0 %v1200_v8 }
 0x644   :  { %2279 = vmatpush3.bf16.msra.mxu0 %v1200_v8 }
 0x645   :  { %2328 = vmatprep.subr.bf16.mxu0 %v3232_v35 }
 0x647   :  { %2281 = vmatmul.mubr.bf16.vlgmr.msra.gmra.mrb[48].mxu0 %v2860_v58  ;;  %v3239_v58 = vld [vmem:[#allocation12 + $0x10] sm:$0xff]  }
 0x648   :  { %2284 = vmatprep.mubr.bf16.mxu0 %v2862_v59  ;;  %2329 = vmatpush3.bf16.msra.mxu0 %v3232_v35  ;;  %v3243_v59 = vld [vmem:[#allocation12 + $0x18] sm:$0xff]  }
 0x649   :  { %2330 = vmatprep.subr.bf16.mxu0 %v3234_v11 }
 0x64c   :  { %2331 = vmatpush3.bf16.msra.mxu0 %v3234_v11 }
 0x64d   :  { %2332 = vmatprep.subr.bf16.mxu0 %v3239_v58 }
 0x64f   :  { %2285 = vmatmul.mubr.bf16.gmra.mrb[52].mxu0 %v2866_v60  ;;  %v3247_v60 = vld [vmem:[#allocation12 + $0x20] sm:$0xff]  }
 0x650   :  { %2288 = vmatprep.mubr.bf16.mxu0 %v2868_v61  ;;  %2333 = vmatpush3.bf16.msra.mxu0 %v3239_v58  ;;  %v3252_v61 = vstv %s1917_s19 }
 0x651   :  { %2334 = vmatprep.subr.bf16.mxu0 %v3243_v59 }
 0x654   :  { %2335 = vmatpush3.bf16.msra.mxu0 %v3243_v59 }
 0x655   :  { %2336 = vmatprep.subr.bf16.mxu0 %v3247_v60 }
 0x657   :  { %2289 = vmatmul.mubr.bf16.gmra.mrb[56].mxu0 %v2872_v62 }
 0x658   :  { %2292 = vmatprep.mubr.bf16.mxu0 %v2874_v63  ;;  %2337 = vmatpush3.bf16.msra.mxu0 %v3247_v60 }
 0x65f   :  { %2293 = vmatmul.mubr.bf16.gmra.mrb[60].mxu0 %v2878_v0 }
 0x71a   :  { %v2282_v62 = vpop.f32.mrb[48].mxu0 }
 0x71b   :  { %v1302_v63 = vmul.f32 %v2282_v62, %v3252_v61  ;;  %v1235_v0 = vpop.f32.mrb[49].mxu0 }
 0x71c   :  { %v1300_v43 = vmul.f32 %v3252_v61, %v1235_v0  ;;  %v2283_v4 = vpop.f32.mrb[50].mxu0 }
 0x71d   :  { %v3257_v50 = vadd.f32 %v1302_v63, %v3153_v9  ;;  %v1303_v53 = vmul.f32 %v2283_v4, %v3252_v61  ;;  %v1333_v22 = vpack.c.bf16 %v2283_v4, %v2282_v62  ;;  %v1238_v51 = vpop.f32.mrb[51].mxu0 }
 0x71e   :  { %v3261_v55 = vadd.f32 %v1300_v43, %v3158_v14  ;;  %v1301_v41 = vmul.f32 %v3252_v61, %v1238_v51  ;;  %v1332_v56 = vpack.c.bf16 %v1238_v51, %v1235_v0  ;;  %v2492_v0 = vld [vmem:[#allocation7 + $0x10] sm:$0xff]   ;;  %v3328_v43 = vstv %s1918_s20 }
 0x71f   :  { %v3265_v1 = vadd.f32 %v1303_v53, %v3161_v27 }
 0x720   :  { %v3268_v7 = vadd.f32 %v1301_v41, %v3163_v31  ;;  %2296 = vmatprep.subr.bf16.mxu1 %v1332_v56 }
 0x721   :  { %2297 = vmatpush3.bf16.msra.mxu1 %v1332_v56 }
 0x722   :  { %v2286_v9 = vpop.f32.mrb[52].mxu0  ;;  %2298 = vmatprep.subr.bf16.mxu1 %v1333_v22 }
 0x723   :  { %v1306_v52 = vmul.f32 %v2286_v9, %v3252_v61  ;;  %v1251_v10 = vpop.f32.mrb[53].mxu0 }
 0x724   :  { %v1304_v24 = vmul.f32 %v3252_v61, %v1251_v10  ;;  %v2287_v14 = vpop.f32.mrb[54].mxu0 }
 0x725   :  { %v3273_v25 = vadd.f32 %v1306_v52, %v3173_v23  ;;  %v1307_v5 = vmul.f32 %v2287_v14, %v3252_v61  ;;  %v1335_v27 = vpack.c.bf16 %v2287_v14, %v2286_v9  ;;  %v1254_v29 = vpop.f32.mrb[55].mxu0  ;;  %2299 = vmatpush3.bf16.msra.mxu1 %v1333_v22 }
 0x726   :  { %v3277_v31 = vadd.f32 %v1304_v24, %v3178_v28  ;;  %v1305_v32 = vmul.f32 %v3252_v61, %v1254_v29  ;;  %v1334_v46 = vpack.c.bf16 %v1254_v29, %v1251_v10 }
 0x727   :  { %v3281_v57 = vadd.f32 %v1307_v5, %v3181_v33 }
 0x728   :  { %v3284_v3 = vadd.f32 %v1305_v32, %v3183_v21  ;;  %2300 = vmatprep.subr.bf16.mxu1 %v1334_v46 }
 0x729   :  { %2301 = vmatpush3.bf16.msra.mxu1 %v1334_v46 }
 0x72a   :  { %v2290_v23 = vpop.f32.mrb[56].mxu0  ;;  %2302 = vmatprep.subr.bf16.mxu1 %v1335_v27 }
 0x72b   :  { %v1310_v17 = vmul.f32 %v2290_v23, %v3252_v61  ;;  %v1267_v36 = vpop.f32.mrb[57].mxu0 }
 0x72c   :  { %v1308_v18 = vmul.f32 %v3252_v61, %v1267_v36  ;;  %v2291_v28 = vpop.f32.mrb[58].mxu0 }
 0x72d   :  { %v3289_v44 = vadd.f32 %v1310_v17, %v3193_v49  ;;  %v1311_v37 = vmul.f32 %v2291_v28, %v3252_v61  ;;  %v1337_v33 = vpack.c.bf16 %v2291_v28, %v2290_v23  ;;  %v1270_v6 = vpop.f32.mrb[59].mxu0  ;;  %2303 = vmatpush3.bf16.msra.mxu1 %v1335_v27 }
 0x72e   :  { %v3293_v21 = vadd.f32 %v1308_v18, %v3198_v54  ;;  %v1309_v42 = vmul.f32 %v3252_v61, %v1270_v6  ;;  %v1336_v16 = vpack.c.bf16 %v1270_v6, %v1267_v36 }
 0x72f   :  { %v3297_v12 = vadd.f32 %v1311_v37, %v3201_v26 }
 0x730   :  { %v3300_v30 = vadd.f32 %v1309_v42, %v3203_v20  ;;  %2304 = vmatprep.subr.bf16.mxu1 %v1336_v16 }
 0x731   :  { %2305 = vmatpush3.bf16.msra.mxu1 %v1336_v16 }
 0x732   :  { %v2294_v49 = vpop.f32.mrb[60].mxu0  ;;  %2306 = vmatprep.subr.bf16.mxu1 %v1337_v33 }
 0x733   :  { %v1314_v45 = vmul.f32 %v2294_v49, %v3252_v61  ;;  %v1283_v13 = vpop.f32.mrb[61].mxu0 }
 0x734   :  { %v1312_v2 = vmul.f32 %v3252_v61, %v1283_v13  ;;  %v2295_v54 = vpop.f32.mrb[62].mxu0 }
 0x735   :  { %v3305_v8 = vadd.f32 %v1314_v45, %v3213_v39  ;;  %v1315_v38 = vmul.f32 %v2295_v54, %v3252_v61  ;;  %v1339_v26 = vpack.c.bf16 %v2295_v54, %v2294_v49  ;;  %v1286_v47 = vpop.f32.mrb[63].mxu0  ;;  %2307 = vmatpush3.bf16.msra.mxu1 %v1337_v33  ;;  %v2491_v39 = vld [vmem:[#allocation7 + $0x8] sm:$0xff]  }
 0x736   :  { %v3309_v20 = vadd.f32 %v1312_v2, %v3218_v34  ;;  %v1313_v15 = vmul.f32 %v3252_v61, %v1286_v47  ;;  %v1338_v19 = vpack.c.bf16 %v1286_v47, %v1283_v13  ;;  %v2493_v34 = vld [vmem:[#allocation7 + $0x18] sm:$0xff]   ;;  %v2424_v61 = vld [vmem:[#allocation12 + $0x28] sm:$0xff]  }
 0x737   :  { %v3313_v62 = vadd.f32 %v1315_v38, %v3221_v48  ;;  %v2494_v48 = vld [vmem:[#allocation7 + $0x20] sm:$0xff]   ;;  %2338 = vmatprep.subr.bf16.mxu0 %v2424_v61 }
 0x738   :  { %v3316_v63 = vadd.f32 %v1313_v15, %v3223_v40  ;;  %2308 = vmatprep.subr.bf16.mxu1 %v1338_v19  ;;  %v2495_v40 = vld [vmem:[#allocation7 + $0x28] sm:$0xff]   ;;  %2339 = vmatpush3.bf16.msra.mxu0 %v2424_v61 }
 0x739   :  { %2309 = vmatpush3.bf16.msra.mxu1 %v1338_v19 }
 0x73a   :  { %2310 = vmatprep.subr.bf16.mxu1 %v1339_v26 }
 0x73d   :  { %2311 = vmatpush3.bf16.msra.mxu1 %v1339_v26 }
 0x73e   :  { %2360 = vmatprep.subr.bf16.mxu1 %v3232_v35 }
 0x740   :  { %2313 = vmatmul.mubr.bf16.vlgmr.msra.gmra.mrb[48].mxu1 %v2491_v39 }
 0x741   :  { %2316 = vmatprep.mubr.bf16.mxu1 %v2492_v0  ;;  %2368 = vmatpush3.bf16.msra.mxu1 %v3232_v35  ;;  %v2496_v35 = vld [vmem:[#allocation7 + $0x30] sm:$0xff]  }
 0x742   :  { %2361 = vmatprep.subr.bf16.mxu1 %v3234_v11 }
 0x745   :  { %2369 = vmatpush3.bf16.msra.mxu1 %v3234_v11  ;;  %v2497_v11 = vld [vmem:[#allocation7 + $0x38] sm:$0xff]  }
 0x746   :  { %2362 = vmatprep.subr.bf16.mxu1 %v3239_v58 }
 0x748   :  { %2317 = vmatmul.mubr.bf16.gmra.mrb[52].mxu1 %v2493_v34 }
 0x749   :  { %2320 = vmatprep.mubr.bf16.mxu1 %v2494_v48  ;;  %2370 = vmatpush3.bf16.msra.mxu1 %v3239_v58  ;;  %v2425_v58 = vld [vmem:[#allocation12 + $0x30] sm:$0xff]  }
 0x74a   :  { %2363 = vmatprep.subr.bf16.mxu1 %v3243_v59  ;;  %2340 = vmatprep.subr.bf16.mxu0 %v2425_v58 }
 0x74b   :  { %2341 = vmatpush3.bf16.msra.mxu0 %v2425_v58 }
 0x74d   :  { %2371 = vmatpush3.bf16.msra.mxu1 %v3243_v59  ;;  %v2426_v59 = vld [vmem:[#allocation12 + $0x38] sm:$0xff]  }
 0x74e   :  { %2364 = vmatprep.subr.bf16.mxu1 %v3247_v60  ;;  %2342 = vmatprep.subr.bf16.mxu0 %v2426_v59 }
 0x74f   :  { %2343 = vmatpush3.bf16.msra.mxu0 %v2426_v59 }
 0x750   :  { %2321 = vmatmul.mubr.bf16.gmra.mrb[56].mxu1 %v2495_v40 }
 0x751   :  { %2324 = vmatprep.mubr.bf16.mxu1 %v2496_v35  ;;  %2372 = vmatpush3.bf16.msra.mxu1 %v3247_v60 }
 0x752   :  { %2365 = vmatprep.subr.bf16.mxu1 %v2424_v61 }
 0x755   :  { %2373 = vmatpush3.bf16.msra.mxu1 %v2424_v61 }
 0x756   :  { %2366 = vmatprep.subr.bf16.mxu1 %v2425_v58 }
 0x758   :  { %2325 = vmatmul.mubr.bf16.gmra.mrb[60].mxu1 %v2497_v11 }
 0x759   :  { %2374 = vmatpush3.bf16.msra.mxu1 %v2425_v58 }
 0x75a   :  { %2367 = vmatprep.subr.bf16.mxu1 %v2426_v59 }
 0x75d   :  { %2375 = vmatpush3.bf16.msra.mxu1 %v2426_v59 }
 0x813   :  { %v2314_v60 = vpop.f32.mrb[48].mxu1 }
 0x814   :  { %v1441_v4 = vmul.f32 %v2314_v60, %v3328_v43  ;;  %v1374_v53 = vpop.f32.mrb[49].mxu1 }
 0x815   :  { %v1439_v22 = vmul.f32 %v3328_v43, %v1374_v53  ;;  %v2315_v51 = vpop.f32.mrb[50].mxu1 }
 0x816   :  { %v1457_v41 = vadd.f32 %v1441_v4, %v3257_v50  ;;  %v1442_v56 = vmul.f32 %v2315_v51, %v3328_v43  ;;  %v1377_v9 = vpop.f32.mrb[51].mxu1 }
 0x817   :  { %v1455_v52 = vadd.f32 %v1439_v22, %v3261_v55  ;;  %v1440_v10 = vmul.f32 %v3328_v43, %v1377_v9 }
 0x818   :  { %v1458_v24 = vadd.f32 %v1442_v56, %v3265_v1  ;;  %v1473_v5 = vmax.f32 %v1457_v41, 0.0 }
 0x819   :  { %v1456_v14 = vadd.f32 %v1440_v10, %v3268_v7  ;;  %v1471_v29 = vmax.f32 %v1455_v52, 0.0 }
 0x81a   :  { %v1474_v27 = vmax.f32 %v1458_v24, 0.0 }
 0x81b   :  { %v1472_v32 = vmax.f32 %v1456_v14, 0.0  ;;  %v2318_v46 = vpop.f32.mrb[52].mxu1 }
 0x81c   :  { %v1488_v23 = vpack.c.bf16 %v1474_v27, %v1473_v5  ;;  %v1445_v17 = vmul.f32 %v2318_v46, %v3328_v43  ;;  %v1390_v50 = vpop.f32.mrb[53].mxu1 }
 0x81d   :  { %v1443_v36 = vmul.f32 %v3328_v43, %v1390_v50  ;;  %v2319_v18 = vpop.f32.mrb[54].mxu1  ;;  %v1487_v28 = vpack.c.bf16 %v1472_v32, %v1471_v29 }
 0x81e   :  { %v1461_v55 = vadd.f32 %v1445_v17, %v3273_v25  ;;  %v1446_v37 = vmul.f32 %v2319_v18, %v3328_v43  ;;  %v1393_v1 = vpop.f32.mrb[55].mxu1 }
 0x81f   :  { %v1459_v7 = vadd.f32 %v1443_v36, %v3277_v31  ;;  %v1444_v33 = vmul.f32 %v3328_v43, %v1393_v1  ;;  %2344 = vmatprep.mubr.bf16.mxu0 %v1487_v28 }
 0x820   :  { %v1462_v6 = vadd.f32 %v1446_v37, %v3281_v57  ;;  %2345 = vmatmul.mubr.bf16.vlgmr.msra.gmra.mrb[64].mxu0 %v1488_v23  ;;  %v1477_v16 = vmax.f32 %v1461_v55, 0.0 }
 0x821   :  { %v1460_v42 = vadd.f32 %v1444_v33, %v3284_v3  ;;  %v1475_v45 = vmax.f32 %v1459_v7, 0.0 }
 0x822   :  { %v1478_v49 = vmax.f32 %v1462_v6, 0.0 }
 0x823   :  { %v1476_v13 = vmax.f32 %v1460_v42, 0.0  ;;  %v2322_v2 = vpop.f32.mrb[56].mxu1 }
 0x824   :  { %v1449_v25 = vmul.f32 %v2322_v2, %v3328_v43  ;;  %v1406_v54 = vpop.f32.mrb[57].mxu1  ;;  %v1490_v38 = vpack.c.bf16 %v1478_v49, %v1477_v16 }
 0x825   :  { %v1447_v26 = vmul.f32 %v3328_v43, %v1406_v54  ;;  %v2323_v31 = vpop.f32.mrb[58].mxu1  ;;  %v1489_v47 = vpack.c.bf16 %v1476_v13, %v1475_v45 }
 0x826   :  { %v1465_v15 = vadd.f32 %v1449_v25, %v3289_v44  ;;  %v1450_v57 = vmul.f32 %v2323_v31, %v3328_v43  ;;  %v1409_v19 = vpop.f32.mrb[59].mxu1 }
 0x827   :  { %v1463_v3 = vadd.f32 %v1447_v26, %v3293_v21  ;;  %v1448_v39 = vmul.f32 %v3328_v43, %v1409_v19  ;;  %2348 = vmatprep.mubr.bf16.mxu0 %v1489_v47 }
 0x828   :  { %v1466_v0 = vadd.f32 %v1450_v57, %v3297_v12  ;;  %2349 = vmatmul.mubr.bf16.gmra.mrb[68].mxu0 %v1490_v38  ;;  %v1481_v48 = vmax.f32 %v1465_v15, 0.0 }
 0x829   :  { %v1464_v34 = vadd.f32 %v1448_v39, %v3300_v30  ;;  %v1479_v35 = vmax.f32 %v1463_v3, 0.0 }
 0x82a   :  { %v1482_v40 = vmax.f32 %v1466_v0, 0.0 }
 0x82b   :  { %v1480_v11 = vmax.f32 %v1464_v34, 0.0  ;;  %v2326_v61 = vpop.f32.mrb[60].mxu1 }
 0x82c   :  { %v1492_v58 = vpack.c.bf16 %v1482_v40, %v1481_v48  ;;  %v1453_v44 = vmul.f32 %v2326_v61, %v3328_v43  ;;  %v1422_v59 = vpop.f32.mrb[61].mxu1 }
 0x82d   :  { %v1451_v60 = vmul.f32 %v3328_v43, %v1422_v59  ;;  %v2327_v21 = vpop.f32.mrb[62].mxu1  ;;  %v1491_v4 = vpack.c.bf16 %v1480_v11, %v1479_v35 }
 0x82e   :  { %v1469_v53 = vadd.f32 %v1453_v44, %v3305_v8  ;;  %v1454_v12 = vmul.f32 %v2327_v21, %v3328_v43  ;;  %v1425_v22 = vpop.f32.mrb[63].mxu1  ;;  %v1663_v8 = vlaneseq }
 0x82f   :  { %v1467_v30 = vadd.f32 %v1451_v60, %v3309_v20  ;;  %v1452_v51 = vmul.f32 %v3328_v43, %v1425_v22  ;;  %2352 = vmatprep.mubr.bf16.mxu1 %v1491_v4  ;;  %v1919_v20 = vld [vmem:[%s3508_s8] ss:$0 sm:$0xff]  ;;  %s2658_s8 = smov [#allocation13]  }
 0x830   :  { %v1470_v41 = vadd.f32 %v1454_v12, %v3313_v62  ;;  %2353 = vmatmul.mubr.bf16.vlgmr.msra.gmra.mrb[64].mxu1 %v1492_v58  ;;  %v1485_v9 = vmax.f32 %v1469_v53, 0.0  ;;  %v3362_v27 = vand.u32 127, %v1663_v8  ;;  %s1863_s25 = sshll.u32 %s2658_s8, 4  ;;  %s1864_s25 = int_to_ptr.vmem [resolvable:$true] %s1863_s25 }
 0x831   :  { %v1468_v56 = vadd.f32 %v1452_v51, %v3316_v63  ;;  %v1483_v10 = vmax.f32 %v1467_v30, 0.0  ;;  %s2618_s1 = scalar_lea.vmem %s1864_s25, 2048  ;;  %p2623_p2 = scmp.lt.s32.totalorder %s1864_s25, %s1864_s25 }
 0x832   :  { %v1486_v52 = vmax.f32 %v1470_v41, 0.0  ;;  %vm1665_vm0 = vcmp.lt.s32.totalorder %v3362_v27, 8  ;;  %p2619_p1 = scmp.ne.s32.totalorder %s1864_s25, %s2618_s1  ;;  %p2624_p3 = scmp.lt.s32.totalorder %s2618_s1, %s2618_s1 }
 0x833   :  { %v1484_v24 = vmax.f32 %v1468_v56, 0.0 }
 0x834   :  { %v1494_v14 = vpack.c.bf16 %v1486_v52, %v1485_v9  ;;  %p2625_p4 = por %p2624_p3, %p2623_p2 }
 0x835   :  { %v1493_v5 = vpack.c.bf16 %v1484_v24, %v1483_v10 }
 0x836   :  { %p2626_p5 = pnand %p2625_p4, %p2619_p1 }
 0x837   :  { %2356 = vmatprep.mubr.bf16.mxu1 %v1493_v5 }
 0x838   :  { %2357 = vmatmul.mubr.bf16.gmra.mrb[68].mxu1 %v1494_v14 }
 0x8f3   :  { %v2346_v43 = vpop.f32.mrb[64].mxu0 }
 0x8f4   :  { %v1609_v62 = vadd.f32 %v2346_v43, %v1919_v20  ;;  %v1600_v63 = vpop.f32.mrb[65].mxu0 }
 0x8f5   :  { %v1601_v29 = vadd.f32 %v1919_v20, %v1600_v63  ;;  %v2347_v32 = vpop.f32.mrb[66].mxu0 }
 0x8f6   :  { %v1612_v46 = vadd.f32 %v2347_v32, %v1919_v20  ;;  %v1603_v23 = vpop.f32.mrb[67].mxu0  ;;  %v1668_v17 = vsel %vm1665_vm0, %v1609_v62, -1e+30 }
 0x8f7   :  { %v1604_v50 = vadd.f32 %v1919_v20, %v1603_v23  ;;  %1686 = vmax.xlane.f32.xlu1 %v1668_v17  ;;  %v1666_v36 = vsel %vm1665_vm0, %v1601_v29, -1e+30 }
 0x8f8   :  { %1682 = vmax.xlane.f32.xlu0 %v1666_v36  ;;  %v1669_v18 = vsel %vm1665_vm0, %v1612_v46, -1e+30 }
 0x8f9   :  { %v1667_v55 = vsel %vm1665_vm0, %v1604_v50, -1e+30 }
 0x8fb   :  { %1688 = vmax.xlane.f32.xlu1 %v1669_v18  ;;  %v2350_v28 = vpop.f32.mrb[68].mxu0 }
 0x8fc   :  { %v1625_v37 = vadd.f32 %v2350_v28, %v1919_v20  ;;  %v1616_v1 = vpop.f32.mrb[69].mxu0  ;;  %1684 = vmax.xlane.f32.xlu0 %v1667_v55 }
 0x8fd   :  { %v2351_v7 = vpop.f32.mrb[70].mxu0  ;;  %v1617_v16 = vadd.f32 %v1919_v20, %v1616_v1 }
 0x8fe   :  { %v1628_v33 = vadd.f32 %v2351_v7, %v1919_v20  ;;  %v1619_v6 = vpop.f32.mrb[71].mxu0  ;;  %v1672_v42 = vsel %vm1665_vm0, %v1625_v37, -1e+30 }
 0x8ff   :  { %v1620_v49 = vadd.f32 %v1919_v20, %v1619_v6  ;;  %v1670_v2 = vsel %vm1665_vm0, %v1617_v16, -1e+30 }
 0x900   :  { %1694 = vmax.xlane.f32.xlu0 %v1672_v42  ;;  %v1673_v45 = vsel %vm1665_vm0, %v1628_v33, -1e+30 }
 0x901   :  { %1696 = vmax.xlane.f32.xlu1 %v1673_v45  ;;  %v1671_v38 = vsel %vm1665_vm0, %v1620_v49, -1e+30 }
 0x903   :  { %v2354_v13 = vpop.f32.mrb[64].mxu1 }
 0x904   :  { %v1641_v25 = vadd.f32 %v2354_v13, %v1919_v20  ;;  %v1632_v54 = vpop.f32.mrb[65].mxu1  ;;  %1690 = vmax.xlane.f32.xlu0 %v1670_v2 }
 0x905   :  { %v2355_v26 = vpop.f32.mrb[66].mxu1  ;;  %1692 = vmax.xlane.f32.xlu1 %v1671_v38  ;;  %v1633_v57 = vadd.f32 %v1919_v20, %v1632_v54 }
 0x906   :  { %v1644_v31 = vadd.f32 %v2355_v26, %v1919_v20  ;;  %v1635_v47 = vpop.f32.mrb[67].mxu1  ;;  %v1676_v15 = vsel %vm1665_vm0, %v1641_v25, -1e+30 }
 0x907   :  { %v1636_v19 = vadd.f32 %v1919_v20, %v1635_v47  ;;  %v3390_v0 = vsel %vm1665_vm0, %v1633_v57, -1e+30 }
 0x908   :  { %1702 = vmax.xlane.f32.xlu0 %v1676_v15  ;;  %v1677_v3 = vsel %vm1665_vm0, %v1644_v31, -1e+30 }
 0x909   :  { %1704 = vmax.xlane.f32.xlu1 %v1677_v3  ;;  %v3395_v48 = vsel %vm1665_vm0, %v1636_v19, -1e+30 }
 0x90b   :  { %v2358_v39 = vpop.f32.mrb[68].mxu1 }
 0x90c   :  { %v1648_v34 = vpop.f32.mrb[69].mxu1  ;;  %1698 = vmax.xlane.f32.xlu0 %v3390_v0  ;;  %v1657_v61 = vadd.f32 %v2358_v39, %v1919_v20 }
 0x90d   :  { %v1649_v40 = vadd.f32 %v1919_v20, %v1648_v34  ;;  %v2359_v35 = vpop.f32.mrb[70].mxu1  ;;  %1700 = vmax.xlane.f32.xlu1 %v3395_v48 }
 0x90e   :  { %v1651_v11 = vpop.f32.mrb[71].mxu1  ;;  %v1660_v59 = vadd.f32 %v2359_v35, %v1919_v20  ;;  %v3410_v21 = vsel %vm1665_vm0, %v1657_v61, -1e+30 }
 0x90f   :  { %v1652_v58 = vadd.f32 %v1919_v20, %v1651_v11  ;;  %v3400_v44 = vsel %vm1665_vm0, %v1649_v40, -1e+30 }
 0x910   :  { %1706 = vmax.xlane.f32.xlu0 %v3400_v44  ;;  %v3415_v4 = vsel %vm1665_vm0, %v1660_v59, -1e+30 }
 0x911   :  { %v3405_v60 = vsel %vm1665_vm0, %v1652_v58, -1e+30 }
 0x912   :  { %1708 = vmax.xlane.f32.xlu1 %v3405_v60 }
 0x914   :  { %1710 = vmax.xlane.f32.xlu0 %v3410_v21 }
 0x916   :  { %1712 = vmax.xlane.f32.xlu1 %v3415_v4 }
 0x984   :  { %v1687_v53 = vpop.xlane.xlu1 %1686 }
 0x985   :  { %v3418_v12 = vsub.f32 %v1668_v17, %v1687_v53  ;;  %v1683_v22 = vpop.xlane.xlu0 %1682 }
 0x986   :  { %v3420_v30 = vsub.f32 %v1666_v36, %v1683_v22 }
 0x987   :  { %v1734_v51 = vmul.f32 1.442695, %v3418_v12 }
 0x988   :  { %v1730_v41 = vmul.f32 1.442695, %v3420_v30  ;;  %v1689_v56 = vpop.xlane.xlu1 %1688 }
 0x989   :  { %2427 = vpow2.f32 %v1734_v51  ;;  %v3424_v9 = vsub.f32 %v1669_v18, %v1689_v56  ;;  %v1685_v52 = vpop.xlane.xlu0 %1684 }
 0x98a   :  { %v3426_v10 = vsub.f32 %v1667_v55, %v1685_v52  ;;  %2429 = vpow2.f32 %v1730_v41 }
 0x98b   :  { %v1736_v24 = vmul.f32 1.442695, %v3424_v9 }
 0x98c   :  { %v1732_v14 = vmul.f32 1.442695, %v3426_v10 }
 0x98d   :  { %2431 = vpow2.f32 %v1736_v24  ;;  %v1695_v5 = vpop.xlane.xlu0 %1694 }
 0x98e   :  { %v3430_v8 = vsub.f32 %v1672_v42, %v1695_v5  ;;  %v1697_v27 = vpop.xlane.xlu1 %1696  ;;  %2433 = vpow2.f32 %v1732_v14 }
 0x98f   :  { %v3432_v20 = vsub.f32 %v1673_v45, %v1697_v27 }
 0x990   :  { %v1742_v43 = vmul.f32 1.442695, %v3430_v8 }
 0x991   :  { %v1744_v62 = vmul.f32 1.442695, %v3432_v20  ;;  %v1691_v63 = vpop.xlane.xlu0 %1690 }
 0x992   :  { %2435 = vpow2.f32 %v1742_v43  ;;  %v3436_v29 = vsub.f32 %v1670_v2, %v1691_v63  ;;  %v1693_v32 = vpop.xlane.xlu1 %1692 }
 0x993   :  { %v2428_v46 = vpop.eup %2427  ;;  %v3438_v23 = vsub.f32 %v1671_v38, %v1693_v32  ;;  %2437 = vpow2.f32 %v1744_v62 }
 0x994   :  { %v1738_v17 = vmul.f32 1.442695, %v3436_v29  ;;  %1766 = vadd.xlane.f32.xlu0 %v2428_v46  ;;  %v2430_v18 = vpop.eup %2429 }
 0x995   :  { %v1740_v50 = vmul.f32 1.442695, %v3438_v23  ;;  %v1703_v36 = vpop.xlane.xlu0 %1702 }
 0x996   :  { %2439 = vpow2.f32 %v1738_v17  ;;  %v3442_v28 = vsub.f32 %v1676_v15, %v1703_v36  ;;  %v1705_v55 = vpop.xlane.xlu1 %1704 }
 0x997   :  { %v2432_v37 = vpop.eup %2431  ;;  %v3444_v1 = vsub.f32 %v1677_v3, %v1705_v55  ;;  %2441 = vpow2.f32 %v1740_v50 }
 0x998   :  { %v1750_v7 = vmul.f32 1.442695, %v3442_v28  ;;  %1768 = vadd.xlane.f32.xlu1 %v2432_v37  ;;  %1762 = vadd.xlane.f32.xlu0 %v2430_v18  ;;  %v2434_v49 = vpop.eup %2433 }
 0x999   :  { %v1752_v33 = vmul.f32 1.442695, %v3444_v1  ;;  %v1699_v6 = vpop.xlane.xlu0 %1698 }
 0x99a   :  { %2443 = vpow2.f32 %v1750_v7  ;;  %v3449_v42 = vsub.f32 %v3390_v0, %v1699_v6  ;;  %v1701_v16 = vpop.xlane.xlu1 %1700 }
 0x99b   :  { %v3452_v45 = vsub.f32 %v3395_v48, %v1701_v16  ;;  %2445 = vpow2.f32 %v1752_v33 }
 0x99c   :  { %v2436_v13 = vpop.eup %2435  ;;  %v1746_v2 = vmul.f32 1.442695, %v3449_v42  ;;  %1764 = vadd.xlane.f32.xlu1 %v2434_v49 }
 0x99d   :  { %v1748_v25 = vmul.f32 1.442695, %v3452_v45  ;;  %1774 = vadd.xlane.f32.xlu0 %v2436_v13  ;;  %v1707_v54 = vpop.xlane.xlu0 %1706  ;;  %v2438_v26 = vpop.eup %2437 }
 0x99e   :  { %2447 = vpow2.f32 %v1746_v2  ;;  %v3457_v38 = vsub.f32 %v3400_v44, %v1707_v54 }
 0x99f   :  { %v1709_v31 = vpop.xlane.xlu1 %1708  ;;  %2449 = vpow2.f32 %v1748_v25 }
 0x9a0   :  { %v2440_v47 = vpop.eup %2439  ;;  %v1754_v15 = vmul.f32 1.442695, %v3457_v38  ;;  %v3461_v57 = vsub.f32 %v3405_v60, %v1709_v31  ;;  %1776 = vadd.xlane.f32.xlu1 %v2438_v26 }
 0x9a1   :  { %1770 = vadd.xlane.f32.xlu0 %v2440_v47  ;;  %v1711_v19 = vpop.xlane.xlu0 %1710  ;;  %v2442_v0 = vpop.eup %2441 }
 0x9a2   :  { %2451 = vpow2.f32 %v1754_v15  ;;  %v1756_v3 = vmul.f32 1.442695, %v3461_v57  ;;  %v3465_v39 = vsub.f32 %v3410_v21, %v1711_v19 }
 0x9a3   :  { %v1713_v34 = vpop.xlane.xlu1 %1712 }
 0x9a4   :  { %v2444_v48 = vpop.eup %2443  ;;  %2453 = vpow2.f32 %v1756_v3  ;;  %v1758_v40 = vmul.f32 1.442695, %v3465_v39  ;;  %v3469_v35 = vsub.f32 %v3415_v4, %v1713_v34  ;;  %1772 = vadd.xlane.f32.xlu1 %v2442_v0 }
 0x9a5   :  { %1782 = vadd.xlane.f32.xlu0 %v2444_v48  ;;  %v2446_v61 = vpop.eup %2445 }
 0x9a6   :  { %2455 = vpow2.f32 %v1758_v40  ;;  %v1760_v11 = vmul.f32 1.442695, %v3469_v35 }
 0x9a8   :  { %v2448_v58 = vpop.eup %2447  ;;  %2457 = vpow2.f32 %v1760_v11  ;;  %1784 = vadd.xlane.f32.xlu1 %v2446_v61 }
 0x9a9   :  { %1778 = vadd.xlane.f32.xlu0 %v2448_v58  ;;  %v2450_v44 = vpop.eup %2449 }
 0x9ac   :  { %v2452_v59 = vpop.eup %2451  ;;  %1780 = vadd.xlane.f32.xlu1 %v2450_v44 }
 0x9ad   :  { %1786 = vadd.xlane.f32.xlu0 %v2452_v59 }
 0x9ae   :  { %v2454_v60 = vpop.eup %2453 }
 0x9b0   :  { %v2456_v21 = vpop.eup %2455  ;;  %1788 = vadd.xlane.f32.xlu1 %v2454_v60 }
 0x9b1   :  { %1790 = vadd.xlane.f32.xlu0 %v2456_v21 }
 0x9b2   :  { %v2458_v4 = vpop.eup %2457 }
 0x9b4   :  { %1792 = vadd.xlane.f32.xlu1 %v2458_v4 }
 0xa21   :  { %v1767_v53 = vpop.xlane.xlu0 %1766 }
 0xa22   :  { %2459 = vlog2.f32 %v1767_v53 }
 0xa25   :  { %v1769_v22 = vpop.xlane.xlu1 %1768  ;;  %v1763_v51 = vpop.xlane.xlu0 %1762 }
 0xa26   :  { %2461 = vlog2.f32 %v1769_v22 }
 0xa27   :  { %2463 = vlog2.f32 %v1763_v51 }
 0xa29   :  { %v1765_v41 = vpop.xlane.xlu1 %1764 }
 0xa2a   :  { %2465 = vlog2.f32 %v1765_v41  ;;  %v1775_v56 = vpop.xlane.xlu0 %1774 }
 0xa2b   :  { %2467 = vlog2.f32 %v1775_v56 }
 0xa2c   :  { %v2460_v52 = vpop.eup %2459 }
 0xa2d   :  { %v1799_v24 = vmul.f32 0.6931472, %v2460_v52  ;;  %v1777_v14 = vpop.xlane.xlu1 %1776 }
 0xa2e   :  { %2469 = vlog2.f32 %v1777_v14  ;;  %v1771_v5 = vpop.xlane.xlu0 %1770 }
 0xa2f   :  { %v1828_v27 = vsub.f32 %v3418_v12, %v1799_v24  ;;  %2471 = vlog2.f32 %v1771_v5 }
 0xa30   :  { %v2462_v43 = vpop.eup %2461 }
 0xa31   :  { %v2464_v62 = vpop.eup %2463  ;;  %1844 = vst [vmem:[#allocation13 + $0x10] sm:$0xff] %v1828_v27  ;;  %v1801_v63 = vmul.f32 0.6931472, %v2462_v43  ;;  %v1773_v32 = vpop.xlane.xlu1 %1772 }
 0xa32   :  { %v1795_v46 = vmul.f32 0.6931472, %v2464_v62  ;;  %2473 = vlog2.f32 %v1773_v32  ;;  %v1783_v17 = vpop.xlane.xlu0 %1782 }
 0xa33   :  { %v1829_v50 = vsub.f32 %v3424_v9, %v1801_v63  ;;  %2475 = vlog2.f32 %v1783_v17 }
 0xa34   :  { %v2466_v36 = vpop.eup %2465  ;;  %v1826_v18 = vsub.f32 %v3420_v30, %v1795_v46 }
 0xa35   :  { %v2468_v55 = vpop.eup %2467  ;;  %1845 = vst [vmem:[#allocation13 + $0x18] sm:$0xff] %v1829_v50  ;;  %v1797_v37 = vmul.f32 0.6931472, %v2466_v36  ;;  %v1785_v7 = vpop.xlane.xlu1 %1784 }
 0xa36   :  { %1842 = vst [vmem:[#allocation13] sm:$0xff] %v1826_v18  ;;  %v1807_v12 = vmul.f32 0.6931472, %v2468_v55  ;;  %2477 = vlog2.f32 %v1785_v7  ;;  %v1779_v33 = vpop.xlane.xlu0 %1778 }
 0xa37   :  { %v1827_v6 = vsub.f32 %v3426_v10, %v1797_v37  ;;  %2479 = vlog2.f32 %v1779_v33 }
 0xa38   :  { %v2470_v16 = vpop.eup %2469  ;;  %v1832_v49 = vsub.f32 %v3430_v8, %v1807_v12 }
 0xa39   :  { %v2472_v13 = vpop.eup %2471  ;;  %1843 = vst [vmem:[#allocation13 + $0x8] sm:$0xff] %v1827_v6  ;;  %v1809_v9 = vmul.f32 0.6931472, %v2470_v16  ;;  %v1781_v2 = vpop.xlane.xlu1 %1780 }
 0xa3a   :  { %1848 = vst [vmem:[#allocation13 + $0x30] sm:$0xff] %v1832_v49  ;;  %v1803_v30 = vmul.f32 0.6931472, %v2472_v13  ;;  %2481 = vlog2.f32 %v1781_v2  ;;  %v1787_v25 = vpop.xlane.xlu0 %1786 }
 0xa3b   :  { %v1833_v54 = vsub.f32 %v3432_v20, %v1809_v9  ;;  %2483 = vlog2.f32 %v1787_v25 }
 0xa3c   :  { %v2474_v26 = vpop.eup %2473  ;;  %v1830_v31 = vsub.f32 %v3436_v29, %v1803_v30 }
 0xa3d   :  { %v2476_v47 = vpop.eup %2475  ;;  %1849 = vst [vmem:[#allocation13 + $0x38] sm:$0xff] %v1833_v54  ;;  %v1805_v10 = vmul.f32 0.6931472, %v2474_v26  ;;  %v1789_v15 = vpop.xlane.xlu1 %1788 }
 0xa3e   :  { %1846 = vst [vmem:[#allocation13 + $0x20] sm:$0xff] %v1830_v31  ;;  %v1815_v8 = vmul.f32 0.6931472, %v2476_v47  ;;  %2485 = vlog2.f32 %v1789_v15  ;;  %v1791_v19 = vpop.xlane.xlu0 %1790 }
 0xa3f   :  { %v1831_v3 = vsub.f32 %v3438_v23, %v1805_v10  ;;  %2487 = vlog2.f32 %v1791_v19 }
 0xa40   :  { %v2478_v0 = vpop.eup %2477  ;;  %v1836_v34 = vsub.f32 %v3442_v28, %v1815_v8 }
 0xa41   :  { %v2480_v48 = vpop.eup %2479  ;;  %1847 = vst [vmem:[#allocation13 + $0x28] sm:$0xff] %v1831_v3  ;;  %v1817_v20 = vmul.f32 0.6931472, %v2478_v0  ;;  %v1793_v40 = vpop.xlane.xlu1 %1792 }
 0xa42   :  { %1852 = vst [vmem:[#allocation13 + $0x50] sm:$0xff] %v1836_v34  ;;  %v1811_v29 = vmul.f32 0.6931472, %v2480_v48  ;;  %2489 = vlog2.f32 %v1793_v40 }
 0xa43   :  { %v1837_v11 = vsub.f32 %v3444_v1, %v1817_v20 }
 0xa44   :  { %v2482_v61 = vpop.eup %2481  ;;  %v1834_v58 = vsub.f32 %v3449_v42, %v1811_v29 }
 0xa45   :  { %v2484_v44 = vpop.eup %2483  ;;  %1853 = vst [vmem:[#allocation13 + $0x58] sm:$0xff] %v1837_v11  ;;  %v1813_v59 = vmul.f32 0.6931472, %v2482_v61 }
 0xa46   :  { %1850 = vst [vmem:[#allocation13 + $0x40] sm:$0xff] %v1834_v58  ;;  %v1819_v23 = vmul.f32 0.6931472, %v2484_v44 }
 0xa47   :  { %v1835_v60 = vsub.f32 %v3452_v45, %v1813_v59 }
 0xa48   :  { %v2486_v28 = vpop.eup %2485  ;;  %v1838_v21 = vsub.f32 %v3457_v38, %v1819_v23 }
 0xa49   :  { %v2488_v4 = vpop.eup %2487  ;;  %1851 = vst [vmem:[#allocation13 + $0x48] sm:$0xff] %v1835_v60  ;;  %v1821_v53 = vmul.f32 0.6931472, %v2486_v28 }
 0xa4a   :  { %1854 = vst [vmem:[#allocation13 + $0x60] sm:$0xff] %v1838_v21  ;;  %v1823_v22 = vmul.f32 0.6931472, %v2488_v4 }
 0xa4b   :  { %v1839_v1 = vsub.f32 %v3461_v57, %v1821_v53 }
 0xa4c   :  { %v2490_v51 = vpop.eup %2489  ;;  %v1840_v42 = vsub.f32 %v3465_v39, %v1823_v22 }
 0xa4d   :  { %1855 = vst [vmem:[#allocation13 + $0x68] sm:$0xff] %v1839_v1  ;;  %v1825_v41 = vmul.f32 0.6931472, %v2490_v51 }
 0xa4e   :  { %1856 = vst [vmem:[#allocation13 + $0x70] sm:$0xff] %v1840_v42 }
 0xa4f   :  { %v1841_v45 = vsub.f32 %v3469_v35, %v1825_v41 }
 0xa51   :  { %1857 = vst [vmem:[#allocation13 + $0x78] sm:$0xff] %v1841_v45 }
 0xa52   :  { %2629 = shalt.err (!%p2626_p5)
}
 0xa53   :  { %s2630_s26 = scalar_lea.hbm %s3509_s9, 2048 }
 0xa54   :  { %p2631_p6 = scmp.ne.s32.totalorder %s3509_s9, %s2630_s26  ;;  %p2634_p7 = scmp.lt.u32.totalorder %s2630_s26, %s3509_s9 }
 0xa56   :  { %p2636_p8 = pnand %p2634_p7, %p2631_p6 }
 0xa58   :  { %2639 = shalt.err (!%p2636_p8)
}
 0xa59   :  { %s2659_s13 = smov 128   ;;  %s2660_s2 = smov 8  }
 0xa5a   :  { %1869 = dma.vmem_to_hbm [thread:$0]  %s1864_s25, 2048, %s3509_s9, [#allocation4], %s2659_s13, %s2659_s13, %s2660_s2  }
 0xa5b   :  { %2648 = dma.done.wait [#allocation4], 2048  }
 0xa5c   :  { %2649 = vsyncadd [#allocation4], 4294965248 }
 0xa5d   :  { %1873 = vsyncpa [#allocation3], 1 }
 0xa5e   :  { %1874 = vsyncpa [#allocation8], 1 }
 0xa5f   :  { %1875 = vsyncpa [#allocation11], 1 }
 0xa60   :  { %1876 = vsyncpa [#allocation4], 1 }
 0xa61   :  { %1877 = vsyncpa [#allocation5], 1 }

</bundles_post_ra>
